<compile_context>
chip_gen: v6e
topology: v6e:2x2x1
jax: 0.10.0
libtpu: 0.0.40
codegen_flags: <defaults>
</compile_context>

<pallas_src>
import functools

import jax
import jax.numpy as jnp
import numpy as np
from jax import lax
from jax.experimental import pallas as pl
from jax.experimental.pallas import tpu as pltpu

GROUPS = 8
EPS = 1e-5
NEG_SLOPE = 0.01  # PyTorch nn.LeakyReLU default


def _kernel(H, W, C, Bb,
            x_ref, mask_ref, gred_ref, gbc_ref,
            gn1w_ref, gn1b_ref, w1_ref, b1_ref,
            gn2w_ref, gn2b_ref, w2_ref, b2_ref,
            y_ref, patch_ref):
    Q = W + 2                     # padded row stride of the flattened spatial axis
    NF = x_ref.shape[-1]          # lane-dense flat spatial size (multiple of 128)
    G = GROUPS
    cpg = C // G
    n_valid = float(H * W * cpg)  # elements per GroupNorm group

    mask = mask_ref[...]          # (1, NF): 1 at valid pixels, 0 at pad / tail
    g_red = gred_ref[...]         # (G, C) group membership (reduce channels->groups)
    g_bc = gbc_ref[...]           # (C, G) group membership (broadcast groups->channels)

    def group_norm(v, gamma, beta):
        # v: (C, NF) f32, zero at invalid positions -> sums only cover valid pixels.
        t1 = jnp.dot(g_red, v, preferred_element_type=jnp.float32)        # (G, NF)
        t2 = jnp.dot(g_red, v * v, preferred_element_type=jnp.float32)    # (G, NF)
        gs1 = jnp.sum(t1, axis=1, keepdims=True)                          # (G, 1)
        gs2 = jnp.sum(t2, axis=1, keepdims=True)                          # (G, 1)
        mean_g = gs1 / n_valid
        # One-pass E[x^2]-E[x]^2 (biased, matching PyTorch GroupNorm).
        var_g = gs2 / n_valid - mean_g * mean_g
        rstd_g = lax.rsqrt(var_g + EPS)
        # Broadcast per-group stats back to per-channel, lane-wide.
        mean = jnp.dot(g_bc, jnp.broadcast_to(mean_g, (G, NF)),
                       preferred_element_type=jnp.float32)                # (C, NF)
        rstd = jnp.dot(g_bc, jnp.broadcast_to(rstd_g, (G, NF)),
                       preferred_element_type=jnp.float32)                # (C, NF)
        return (v - mean) * (rstd * gamma) + beta

    def leaky_mask(v):
        # LeakyReLU, then re-zero padding (the convs rely on zero spatial padding).
        return jnp.where(v > 0, v, NEG_SLOPE * v) * mask

    def conv3x3(v, w_ref, bias):
        # v: (C, NF) f32, zero at invalid positions.  Build an im2col patch from
        # the 9 lane-rolled taps (interior pixels never see a wrap; wrapped values
        # only reach border/tail positions that get masked away) and do a single
        # (C, 9C) @ (9C, NF) MXU matmul with f32 accumulation.
        for ky in range(3):
            for kx in range(3):
                k = ky * 3 + kx
                off = (ky - 1) * Q + (kx - 1)
                shift = (-off) % NF                  # jnp.roll convention
                tap = v if shift == 0 else pltpu.roll(v, shift, axis=1)
                patch_ref[k * C:(k + 1) * C, :] = tap.astype(patch_ref.dtype)
        acc = jnp.dot(w_ref[...], patch_ref[...],
                      preferred_element_type=jnp.float32)                 # (C, NF)
        return acc + bias

    for b in range(Bb):             # small static batch block per grid step
        x = x_ref[b]                # (C, NF) f32, zero at pad / tail positions
        h = leaky_mask(group_norm(x, gn1w_ref[...], gn1b_ref[...]))
        h = conv3x3(h, w1_ref, b1_ref[...]) * mask   # re-zero pad for GN2 stats
        h = leaky_mask(group_norm(h, gn2w_ref[...], gn2b_ref[...]))
        h = conv3x3(h, w2_ref, b2_ref[...])
        y_ref[b] = (h + x) * mask   # residual; pad/tail zeroed (wrapper strips it)


def const_residual_block(x_nchw, params, *, conv_dtype=jnp.bfloat16, batch_block=1):
    """Pallas implementation. x_nchw: (B, C, H, W) float32 (PyTorch layout)."""
    w1, b1, w2, b2, g1w, g1b, g2w, g2b = params    # conv weights in HWIO
    B, C, H, W = x_nchw.shape
    G = GROUPS
    assert C % G == 0 and C % 8 == 0
    assert B % batch_block == 0
    P, Q = H + 2, W + 2
    NPAD = P * Q
    NF = ((NPAD + 127) // 128) * 128               # lane-dense flat spatial axis

    # Glue (no transposes needed for the channel-major layout):
    # NCHW -> zero-padded (B, C, P, Q) -> (B, C, NF) with a zero tail.
    xf = x_nchw.astype(jnp.float32)
    x_pf = jnp.pad(xf, ((0, 0), (0, 0), (1, 1), (1, 1))).reshape(B, C, NPAD)
    x_pf = jnp.pad(x_pf, ((0, 0), (0, 0), (0, NF - NPAD)))

    # Tiny (1, NF) validity mask; padding + tail positions are 0.
    m2d = jnp.pad(jnp.ones((H, W), jnp.float32), ((1, 1), (1, 1))).reshape(1, NPAD)
    mask = jnp.pad(m2d, ((0, 0), (0, NF - NPAD)))

    # Factored group-membership matrices: O(C*G) instead of a dense (C, C).
    gidx = jnp.arange(C) // (C // G)
    g_red = (gidx[None, :] == jnp.arange(G)[:, None]).astype(jnp.float32)  # (G, C)
    g_bc = g_red.T                                                         # (C, G)

    # Conv weights (3,3,Cin,Cout) HWIO -> (Cout, 9*Cin) so each conv is a single
    # MXU matmul against the (9*Cin, NF) im2col patch.
    def flat_w(w):
        return jnp.transpose(w, (3, 0, 1, 2)).reshape(C, 9 * C).astype(conv_dtype)
    w1f, w2f = flat_w(w1), flat_w(w2)

    def col(v):
        return v.reshape(C, 1).astype(jnp.float32)

    Bb = batch_block
    grid = (B // Bb,)

    def full2(shape):
        return pl.BlockSpec(shape, lambda i: (0, 0))

    kernel = functools.partial(_kernel, H, W, C, Bb)

    itemsize = jnp.dtype(conv_dtype).itemsize
    cost = pl.CostEstimate(
        flops=B * (4 * 9 * C * C * NF + 16 * G * C * NF),
        transcendentals=B * 2 * G,
        bytes_accessed=(2 * B * C * NF * 4 + 2 * C * 9 * C * itemsize
                        + (6 * C + NF + 2 * G * C) * 4))

    y_pf = pl.pallas_call(
        kernel,
        out_shape=jax.ShapeDtypeStruct((B, C, NF), jnp.float32),
        grid=grid,
        in_specs=[
            pl.BlockSpec((Bb, C, NF), lambda i: (i, 0, 0)),   # x (padded flat)
            full2((1, NF)),                                   # validity mask
            full2((G, C)), full2((C, G)),                     # group matrices
            full2((C, 1)), full2((C, 1)),                     # gn1 weight / bias
            full2((C, 9 * C)), full2((C, 1)),                 # conv1 weight / bias
            full2((C, 1)), full2((C, 1)),                     # gn2 weight / bias
            full2((C, 9 * C)), full2((C, 1)),                 # conv2 weight / bias
        ],
        out_specs=pl.BlockSpec((Bb, C, NF), lambda i: (i, 0, 0)),
        scratch_shapes=[pltpu.VMEM((9 * C, NF), conv_dtype)],  # im2col patch
        compiler_params=pltpu.CompilerParams(
            dimension_semantics=("parallel",),                 # v7x: 2 TCs split batch
            vmem_limit_bytes=32 * 1024 * 1024),
        cost_estimate=cost,
    )(x_pf, mask, g_red, g_bc,
      col(g1w), col(g1b), w1f, col(b1),
      col(g2w), col(g2b), w2f, col(b2))

    # Glue: drop the flat tail, strip spatial padding.  Already channel-major.
    y = y_pf[:, :, :NPAD].reshape(B, C, P, Q)[:, :, 1:H + 1, 1:W + 1]
    return y


# ----------------------- pure-JAX reference (for checking) -----------------------
def _ref_group_norm(x_nhwc, gamma, beta):
    B, H, W, C = x_nhwc.shape
    xg = x_nhwc.reshape(B, H, W, GROUPS, C // GROUPS)
    mean = xg.mean(axis=(1, 2, 4), keepdims=True)
    var = ((xg - mean) ** 2).mean(axis=(1, 2, 4), keepdims=True)
    xn = ((xg - mean) / jnp.sqrt(var + EPS)).reshape(B, H, W, C)
    return xn * gamma + beta


def _ref_conv(x_nhwc, w_hwio, bias):
    y = lax.conv_general_dilated(x_nhwc, w_hwio, (1, 1), 'SAME',
                                 dimension_numbers=('NHWC', 'HWIO', 'NHWC'))
    return y + bias


def ref_forward(x_nchw, params):
    w1, b1, w2, b2, g1w, g1b, g2w, g2b = params
    x = jnp.transpose(x_nchw, (0, 2, 3, 1))
    h = _ref_group_norm(x, g1w, g1b)
    h = jnp.where(h > 0, h, NEG_SLOPE * h)
    h = _ref_conv(h, w1, b1)
    h = _ref_group_norm(h, g2w, g2b)
    h = jnp.where(h > 0, h, NEG_SLOPE * h)
    h = _ref_conv(h, w2, b2)
    return jnp.transpose(h + x, (0, 3, 1, 2))


if __name__ == "__main__":
    # Residual x + x_in forces in_channels == out_channels; GroupNorm(8, C) -> C % 8 == 0.
    B, C, H, W = 2, 16, 16, 16
    key = jax.random.PRNGKey(0)
    ks = jax.random.split(key, 9)
    x = jax.random.normal(ks[0], (B, C, H, W), jnp.float32)
    w1 = 0.1 * jax.random.normal(ks[1], (3, 3, C, C), jnp.float32)   # HWIO
    b1 = 0.1 * jax.random.normal(ks[2], (C,), jnp.float32)
    w2 = 0.1 * jax.random.normal(ks[3], (3, 3, C, C), jnp.float32)
    b2 = 0.1 * jax.random.normal(ks[4], (C,), jnp.float32)
    g1w = 1.0 + 0.1 * jax.random.normal(ks[5], (C,), jnp.float32)
    g1b = 0.1 * jax.random.normal(ks[6], (C,), jnp.float32)
    g2w = 1.0 + 0.1 * jax.random.normal(ks[7], (C,), jnp.float32)
    g2b = 0.1 * jax.random.normal(ks[8], (C,), jnp.float32)
    params = (w1, b1, w2, b2, g1w, g1b, g2w, g2b)

    y_ref = jax.block_until_ready(ref_forward(x, params))

    # Fast path: bf16 MXU conv matmuls with f32 accumulation (tolerance loosened
    # accordingly; GroupNorm statistics remain f32).
    y = jax.block_until_ready(const_residual_block(x, params))
    np.testing.assert_allclose(np.asarray(y), np.asarray(y_ref),
                               atol=5e-2, rtol=5e-2)

    print("KERNEL_OK")
</pallas_src>

<mosaic_0001>
module attributes {stable_mosaic.version = 11 : i64} {
  func.func @_kernel(%arg0: i32, %arg1: memref<1x16x384xf32, #tpu.memory_space<vmem>>, %arg2: memref<1x384xf32, #tpu.memory_space<vmem>>, %arg3: memref<8x16xf32, #tpu.memory_space<vmem>>, %arg4: memref<16x8xf32, #tpu.memory_space<vmem>>, %arg5: memref<16x1xf32, #tpu.memory_space<vmem>>, %arg6: memref<16x1xf32, #tpu.memory_space<vmem>>, %arg7: memref<16x144xbf16, #tpu.memory_space<vmem>>, %arg8: memref<16x1xf32, #tpu.memory_space<vmem>>, %arg9: memref<16x1xf32, #tpu.memory_space<vmem>>, %arg10: memref<16x1xf32, #tpu.memory_space<vmem>>, %arg11: memref<16x144xbf16, #tpu.memory_space<vmem>>, %arg12: memref<16x1xf32, #tpu.memory_space<vmem>>, %arg13: memref<1x16x384xf32, #tpu.memory_space<vmem>>, %arg14: memref<144x384xbf16, #tpu.memory_space<vmem>>) attributes {dimension_semantics = [#tpu.dimension_semantics<parallel>], iteration_bounds = array<i64: 2>, scalar_prefetch = 0 : i64, scratch_operands = 1 : i64, tpu.core_type = #tpu.core_type<tc>, window_params = [{transform_indices = @transform_0, window_bounds = array<i64: 1, 16, 384>}, {pipeline_mode = #tpu.pipeline_mode<synchronous>, transform_indices = @transform_1, window_bounds = array<i64: 1, 384>}, {pipeline_mode = #tpu.pipeline_mode<synchronous>, transform_indices = @transform_2, window_bounds = array<i64: 8, 16>}, {pipeline_mode = #tpu.pipeline_mode<synchronous>, transform_indices = @transform_3, window_bounds = array<i64: 16, 8>}, {pipeline_mode = #tpu.pipeline_mode<synchronous>, transform_indices = @transform_4, window_bounds = array<i64: 16, 1>}, {pipeline_mode = #tpu.pipeline_mode<synchronous>, transform_indices = @transform_5, window_bounds = array<i64: 16, 1>}, {pipeline_mode = #tpu.pipeline_mode<synchronous>, transform_indices = @transform_6, window_bounds = array<i64: 16, 144>}, {pipeline_mode = #tpu.pipeline_mode<synchronous>, transform_indices = @transform_7, window_bounds = array<i64: 16, 1>}, {pipeline_mode = #tpu.pipeline_mode<synchronous>, transform_indices = @transform_8, window_bounds = array<i64: 16, 1>}, {pipeline_mode = #tpu.pipeline_mode<synchronous>, transform_indices = @transform_9, window_bounds = array<i64: 16, 1>}, {pipeline_mode = #tpu.pipeline_mode<synchronous>, transform_indices = @transform_10, window_bounds = array<i64: 16, 144>}, {pipeline_mode = #tpu.pipeline_mode<synchronous>, transform_indices = @transform_11, window_bounds = array<i64: 16, 1>}, {transform_indices = @transform_12, window_bounds = array<i64: 1, 16, 384>}]} {
    %c0 = arith.constant 0 : index
    %c0_0 = arith.constant 0 : index
    %0 = vector.load %arg2[%c0, %c0_0] : memref<1x384xf32, #tpu.memory_space<vmem>>, vector<1x384xf32>
    %c0_1 = arith.constant 0 : index
    %c0_2 = arith.constant 0 : index
    %1 = vector.load %arg3[%c0_1, %c0_2] : memref<8x16xf32, #tpu.memory_space<vmem>>, vector<8x16xf32>
    %c0_3 = arith.constant 0 : index
    %c0_4 = arith.constant 0 : index
    %2 = vector.load %arg4[%c0_3, %c0_4] : memref<16x8xf32, #tpu.memory_space<vmem>>, vector<16x8xf32>
    %c0_5 = arith.constant 0 : index
    %c0_6 = arith.constant 0 : index
    %c0_7 = arith.constant 0 : index
    %3 = vector.load %arg1[%c0_5, %c0_6, %c0_7] : memref<1x16x384xf32, #tpu.memory_space<vmem>>, vector<1x16x384xf32>
    %4 = vector.shape_cast %3 : vector<1x16x384xf32> to vector<16x384xf32>
    %c0_8 = arith.constant 0 : index
    %c0_9 = arith.constant 0 : index
    %5 = vector.load %arg5[%c0_8, %c0_9] : memref<16x1xf32, #tpu.memory_space<vmem>>, vector<16x1xf32>
    %c0_10 = arith.constant 0 : index
    %c0_11 = arith.constant 0 : index
    %6 = vector.load %arg6[%c0_10, %c0_11] : memref<16x1xf32, #tpu.memory_space<vmem>>, vector<16x1xf32>
    %cst = arith.constant dense<0.000000e+00> : vector<8x384xf32>
    %7 = tpu.matmul %1, %4, %cst {dimension_numbers = #tpu.dot_dimension_numbers<[1], [0], [0], [1], [0, 0, 1, 1], [], []>} : vector<8x16xf32>, vector<16x384xf32>, vector<8x384xf32> -> vector<8x384xf32>
    %8 = arith.mulf %4, %4 : vector<16x384xf32>
    %cst_12 = arith.constant dense<0.000000e+00> : vector<8x384xf32>
    %9 = tpu.matmul %1, %8, %cst_12 {dimension_numbers = #tpu.dot_dimension_numbers<[1], [0], [0], [1], [0, 0, 1, 1], [], []>} : vector<8x16xf32>, vector<16x384xf32>, vector<8x384xf32> -> vector<8x384xf32>
    %cst_13 = arith.constant dense<0.000000e+00> : vector<8xf32>
    %10 = vector.multi_reduction <add>, %7, %cst_13 [1] : vector<8x384xf32> to vector<8xf32>
    %11 = vector.shape_cast %10 : vector<8xf32> to vector<8x1xf32>
    %cst_14 = arith.constant dense<0.000000e+00> : vector<8xf32>
    %12 = vector.multi_reduction <add>, %9, %cst_14 [1] : vector<8x384xf32> to vector<8xf32>
    %13 = vector.shape_cast %12 : vector<8xf32> to vector<8x1xf32>
    %cst_15 = arith.constant 5.120000e+02 : f32
    %14 = vector.broadcast %cst_15 : f32 to vector<8x1xf32>
    %15 = arith.divf %11, %14 : vector<8x1xf32>
    %cst_16 = arith.constant 5.120000e+02 : f32
    %16 = vector.broadcast %cst_16 : f32 to vector<8x1xf32>
    %17 = arith.divf %13, %16 : vector<8x1xf32>
    %18 = arith.mulf %15, %15 : vector<8x1xf32>
    %19 = arith.subf %17, %18 : vector<8x1xf32>
    %cst_17 = arith.constant 9.99999974E-6 : f32
    %20 = vector.broadcast %cst_17 : f32 to vector<8x1xf32>
    %21 = arith.addf %19, %20 : vector<8x1xf32>
    %22 = math.rsqrt %21 : vector<8x1xf32>
    %23 = vector.shape_cast %15 : vector<8x1xf32> to vector<8x1xf32>
    %24 = vector.broadcast %23 : vector<8x1xf32> to vector<8x384xf32>
    %cst_18 = arith.constant dense<0.000000e+00> : vector<16x384xf32>
    %25 = tpu.matmul %2, %24, %cst_18 {dimension_numbers = #tpu.dot_dimension_numbers<[1], [0], [0], [1], [0, 0, 1, 1], [], []>} : vector<16x8xf32>, vector<8x384xf32>, vector<16x384xf32> -> vector<16x384xf32>
    %26 = vector.shape_cast %22 : vector<8x1xf32> to vector<8x1xf32>
    %27 = vector.broadcast %26 : vector<8x1xf32> to vector<8x384xf32>
    %cst_19 = arith.constant dense<0.000000e+00> : vector<16x384xf32>
    %28 = tpu.matmul %2, %27, %cst_19 {dimension_numbers = #tpu.dot_dimension_numbers<[1], [0], [0], [1], [0, 0, 1, 1], [], []>} : vector<16x8xf32>, vector<8x384xf32>, vector<16x384xf32> -> vector<16x384xf32>
    %29 = arith.subf %4, %25 : vector<16x384xf32>
    %30 = vector.broadcast %5 : vector<16x1xf32> to vector<16x384xf32>
    %31 = arith.mulf %28, %30 : vector<16x384xf32>
    %32 = arith.mulf %29, %31 : vector<16x384xf32>
    %33 = vector.broadcast %6 : vector<16x1xf32> to vector<16x384xf32>
    %34 = arith.addf %32, %33 : vector<16x384xf32>
    %cst_20 = arith.constant 0.000000e+00 : f32
    %35 = vector.broadcast %cst_20 : f32 to vector<16x384xf32>
    %36 = arith.cmpf ogt, %34, %35 : vector<16x384xf32>
    %cst_21 = arith.constant 0.00999999977 : f32
    %37 = vector.broadcast %cst_21 : f32 to vector<16x384xf32>
    %38 = arith.mulf %37, %34 : vector<16x384xf32>
    %39 = arith.select %36, %34, %38 : vector<16x384xi1>, vector<16x384xf32>
    %40 = vector.broadcast %0 : vector<1x384xf32> to vector<16x384xf32>
    %41 = arith.mulf %39, %40 : vector<16x384xf32>
    %c0_22 = arith.constant 0 : index
    %c0_23 = arith.constant 0 : index
    %42 = vector.load %arg8[%c0_22, %c0_23] : memref<16x1xf32, #tpu.memory_space<vmem>>, vector<16x1xf32>
    %c19_i32 = arith.constant 19 : i32
    %43 = tpu.dynamic_rotate %41 by %c19_i32 dim 1 : vector<16x384xf32>, i32 -> vector<16x384xf32>
    %44 = arith.truncf %43 : vector<16x384xf32> to vector<16x384xbf16>
    %c0_24 = arith.constant 0 : index
    %c0_25 = arith.constant 0 : index
    %45 = vector.load %arg14[%c0_24, %c0_25] : memref<144x384xbf16, #tpu.memory_space<vmem>>, vector<16x384xbf16>
    tpu.vector_store %arg14[%c0_24, %c0_25], %44 {strides = array<i32>} : memref<144x384xbf16, #tpu.memory_space<vmem>>, vector<16x384xbf16>,
    %c18_i32 = arith.constant 18 : i32
    %46 = tpu.dynamic_rotate %41 by %c18_i32 dim 1 : vector<16x384xf32>, i32 -> vector<16x384xf32>
    %47 = arith.truncf %46 : vector<16x384xf32> to vector<16x384xbf16>
    %c16 = arith.constant 16 : index
    %c0_26 = arith.constant 0 : index
    %48 = vector.load %arg14[%c16, %c0_26] : memref<144x384xbf16, #tpu.memory_space<vmem>>, vector<16x384xbf16>
    tpu.vector_store %arg14[%c16, %c0_26], %47 {strides = array<i32>} : memref<144x384xbf16, #tpu.memory_space<vmem>>, vector<16x384xbf16>,
    %c17_i32 = arith.constant 17 : i32
    %49 = tpu.dynamic_rotate %41 by %c17_i32 dim 1 : vector<16x384xf32>, i32 -> vector<16x384xf32>
    %50 = arith.truncf %49 : vector<16x384xf32> to vector<16x384xbf16>
    %c32 = arith.constant 32 : index
    %c0_27 = arith.constant 0 : index
    %51 = vector.load %arg14[%c32, %c0_27] : memref<144x384xbf16, #tpu.memory_space<vmem>>, vector<16x384xbf16>
    tpu.vector_store %arg14[%c32, %c0_27], %50 {strides = array<i32>} : memref<144x384xbf16, #tpu.memory_space<vmem>>, vector<16x384xbf16>,
    %c1_i32 = arith.constant 1 : i32
    %52 = tpu.dynamic_rotate %41 by %c1_i32 dim 1 : vector<16x384xf32>, i32 -> vector<16x384xf32>
    %53 = arith.truncf %52 : vector<16x384xf32> to vector<16x384xbf16>
    %c48 = arith.constant 48 : index
    %c0_28 = arith.constant 0 : index
    %54 = vector.load %arg14[%c48, %c0_28] : memref<144x384xbf16, #tpu.memory_space<vmem>>, vector<16x384xbf16>
    tpu.vector_store %arg14[%c48, %c0_28], %53 {strides = array<i32>} : memref<144x384xbf16, #tpu.memory_space<vmem>>, vector<16x384xbf16>,
    %55 = arith.truncf %41 : vector<16x384xf32> to vector<16x384xbf16>
    %c64 = arith.constant 64 : index
    %c0_29 = arith.constant 0 : index
    %56 = vector.load %arg14[%c64, %c0_29] : memref<144x384xbf16, #tpu.memory_space<vmem>>, vector<16x384xbf16>
    tpu.vector_store %arg14[%c64, %c0_29], %55 {strides = array<i32>} : memref<144x384xbf16, #tpu.memory_space<vmem>>, vector<16x384xbf16>,
    %c383_i32 = arith.constant 383 : i32
    %57 = tpu.dynamic_rotate %41 by %c383_i32 dim 1 : vector<16x384xf32>, i32 -> vector<16x384xf32>
    %58 = arith.truncf %57 : vector<16x384xf32> to vector<16x384xbf16>
    %c80 = arith.constant 80 : index
    %c0_30 = arith.constant 0 : index
    %59 = vector.load %arg14[%c80, %c0_30] : memref<144x384xbf16, #tpu.memory_space<vmem>>, vector<16x384xbf16>
    tpu.vector_store %arg14[%c80, %c0_30], %58 {strides = array<i32>} : memref<144x384xbf16, #tpu.memory_space<vmem>>, vector<16x384xbf16>,
    %c367_i32 = arith.constant 367 : i32
    %60 = tpu.dynamic_rotate %41 by %c367_i32 dim 1 : vector<16x384xf32>, i32 -> vector<16x384xf32>
    %61 = arith.truncf %60 : vector<16x384xf32> to vector<16x384xbf16>
    %c96 = arith.constant 96 : index
    %c0_31 = arith.constant 0 : index
    %62 = vector.load %arg14[%c96, %c0_31] : memref<144x384xbf16, #tpu.memory_space<vmem>>, vector<16x384xbf16>
    tpu.vector_store %arg14[%c96, %c0_31], %61 {strides = array<i32>} : memref<144x384xbf16, #tpu.memory_space<vmem>>, vector<16x384xbf16>,
    %c366_i32 = arith.constant 366 : i32
    %63 = tpu.dynamic_rotate %41 by %c366_i32 dim 1 : vector<16x384xf32>, i32 -> vector<16x384xf32>
    %64 = arith.truncf %63 : vector<16x384xf32> to vector<16x384xbf16>
    %c112 = arith.constant 112 : index
    %c0_32 = arith.constant 0 : index
    %65 = vector.load %arg14[%c112, %c0_32] : memref<144x384xbf16, #tpu.memory_space<vmem>>, vector<16x384xbf16>
    tpu.vector_store %arg14[%c112, %c0_32], %64 {strides = array<i32>} : memref<144x384xbf16, #tpu.memory_space<vmem>>, vector<16x384xbf16>,
    %c365_i32 = arith.constant 365 : i32
    %66 = tpu.dynamic_rotate %41 by %c365_i32 dim 1 : vector<16x384xf32>, i32 -> vector<16x384xf32>
    %67 = arith.truncf %66 : vector<16x384xf32> to vector<16x384xbf16>
    %c128 = arith.constant 128 : index
    %c0_33 = arith.constant 0 : index
    %68 = vector.load %arg14[%c128, %c0_33] : memref<144x384xbf16, #tpu.memory_space<vmem>>, vector<16x384xbf16>
    tpu.vector_store %arg14[%c128, %c0_33], %67 {strides = array<i32>} : memref<144x384xbf16, #tpu.memory_space<vmem>>, vector<16x384xbf16>,
    %c0_34 = arith.constant 0 : index
    %c0_35 = arith.constant 0 : index
    %69 = vector.load %arg7[%c0_34, %c0_35] : memref<16x144xbf16, #tpu.memory_space<vmem>>, vector<16x144xbf16>
    %c0_36 = arith.constant 0 : index
    %c0_37 = arith.constant 0 : index
    %70 = vector.load %arg14[%c0_36, %c0_37] : memref<144x384xbf16, #tpu.memory_space<vmem>>, vector<144x384xbf16>
    %cst_38 = arith.constant dense<0.000000e+00> : vector<16x384xf32>
    %71 = tpu.matmul %69, %70, %cst_38 {dimension_numbers = #tpu.dot_dimension_numbers<[1], [0], [0], [1], [0, 0, 1, 1], [], []>} : vector<16x144xbf16>, vector<144x384xbf16>, vector<16x384xf32> -> vector<16x384xf32>
    %72 = vector.broadcast %42 : vector<16x1xf32> to vector<16x384xf32>
    %73 = arith.addf %71, %72 : vector<16x384xf32>
    %74 = vector.broadcast %0 : vector<1x384xf32> to vector<16x384xf32>
    %75 = arith.mulf %73, %74 : vector<16x384xf32>
    %c0_39 = arith.constant 0 : index
    %c0_40 = arith.constant 0 : index
    %76 = vector.load %arg9[%c0_39, %c0_40] : memref<16x1xf32, #tpu.memory_space<vmem>>, vector<16x1xf32>
    %c0_41 = arith.constant 0 : index
    %c0_42 = arith.constant 0 : index
    %77 = vector.load %arg10[%c0_41, %c0_42] : memref<16x1xf32, #tpu.memory_space<vmem>>, vector<16x1xf32>
    %cst_43 = arith.constant dense<0.000000e+00> : vector<8x384xf32>
    %78 = tpu.matmul %1, %75, %cst_43 {dimension_numbers = #tpu.dot_dimension_numbers<[1], [0], [0], [1], [0, 0, 1, 1], [], []>} : vector<8x16xf32>, vector<16x384xf32>, vector<8x384xf32> -> vector<8x384xf32>
    %79 = arith.mulf %75, %75 : vector<16x384xf32>
    %cst_44 = arith.constant dense<0.000000e+00> : vector<8x384xf32>
    %80 = tpu.matmul %1, %79, %cst_44 {dimension_numbers = #tpu.dot_dimension_numbers<[1], [0], [0], [1], [0, 0, 1, 1], [], []>} : vector<8x16xf32>, vector<16x384xf32>, vector<8x384xf32> -> vector<8x384xf32>
    %cst_45 = arith.constant dense<0.000000e+00> : vector<8xf32>
    %81 = vector.multi_reduction <add>, %78, %cst_45 [1] : vector<8x384xf32> to vector<8xf32>
    %82 = vector.shape_cast %81 : vector<8xf32> to vector<8x1xf32>
    %cst_46 = arith.constant dense<0.000000e+00> : vector<8xf32>
    %83 = vector.multi_reduction <add>, %80, %cst_46 [1] : vector<8x384xf32> to vector<8xf32>
    %84 = vector.shape_cast %83 : vector<8xf32> to vector<8x1xf32>
    %cst_47 = arith.constant 5.120000e+02 : f32
    %85 = vector.broadcast %cst_47 : f32 to vector<8x1xf32>
    %86 = arith.divf %82, %85 : vector<8x1xf32>
    %cst_48 = arith.constant 5.120000e+02 : f32
    %87 = vector.broadcast %cst_48 : f32 to vector<8x1xf32>
    %88 = arith.divf %84, %87 : vector<8x1xf32>
    %89 = arith.mulf %86, %86 : vector<8x1xf32>
    %90 = arith.subf %88, %89 : vector<8x1xf32>
    %cst_49 = arith.constant 9.99999974E-6 : f32
    %91 = vector.broadcast %cst_49 : f32 to vector<8x1xf32>
    %92 = arith.addf %90, %91 : vector<8x1xf32>
    %93 = math.rsqrt %92 : vector<8x1xf32>
    %94 = vector.shape_cast %86 : vector<8x1xf32> to vector<8x1xf32>
    %95 = vector.broadcast %94 : vector<8x1xf32> to vector<8x384xf32>
    %cst_50 = arith.constant dense<0.000000e+00> : vector<16x384xf32>
    %96 = tpu.matmul %2, %95, %cst_50 {dimension_numbers = #tpu.dot_dimension_numbers<[1], [0], [0], [1], [0, 0, 1, 1], [], []>} : vector<16x8xf32>, vector<8x384xf32>, vector<16x384xf32> -> vector<16x384xf32>
    %97 = vector.shape_cast %93 : vector<8x1xf32> to vector<8x1xf32>
    %98 = vector.broadcast %97 : vector<8x1xf32> to vector<8x384xf32>
    %cst_51 = arith.constant dense<0.000000e+00> : vector<16x384xf32>
    %99 = tpu.matmul %2, %98, %cst_51 {dimension_numbers = #tpu.dot_dimension_numbers<[1], [0], [0], [1], [0, 0, 1, 1], [], []>} : vector<16x8xf32>, vector<8x384xf32>, vector<16x384xf32> -> vector<16x384xf32>
    %100 = arith.subf %75, %96 : vector<16x384xf32>
    %101 = vector.broadcast %76 : vector<16x1xf32> to vector<16x384xf32>
    %102 = arith.mulf %99, %101 : vector<16x384xf32>
    %103 = arith.mulf %100, %102 : vector<16x384xf32>
    %104 = vector.broadcast %77 : vector<16x1xf32> to vector<16x384xf32>
    %105 = arith.addf %103, %104 : vector<16x384xf32>
    %cst_52 = arith.constant 0.000000e+00 : f32
    %106 = vector.broadcast %cst_52 : f32 to vector<16x384xf32>
    %107 = arith.cmpf ogt, %105, %106 : vector<16x384xf32>
    %cst_53 = arith.constant 0.00999999977 : f32
    %108 = vector.broadcast %cst_53 : f32 to vector<16x384xf32>
    %109 = arith.mulf %108, %105 : vector<16x384xf32>
    %110 = arith.select %107, %105, %109 : vector<16x384xi1>, vector<16x384xf32>
    %111 = vector.broadcast %0 : vector<1x384xf32> to vector<16x384xf32>
    %112 = arith.mulf %110, %111 : vector<16x384xf32>
    %c0_54 = arith.constant 0 : index
    %c0_55 = arith.constant 0 : index
    %113 = vector.load %arg12[%c0_54, %c0_55] : memref<16x1xf32, #tpu.memory_space<vmem>>, vector<16x1xf32>
    %c19_i32_56 = arith.constant 19 : i32
    %114 = tpu.dynamic_rotate %112 by %c19_i32_56 dim 1 : vector<16x384xf32>, i32 -> vector<16x384xf32>
    %115 = arith.truncf %114 : vector<16x384xf32> to vector<16x384xbf16>
    %c0_57 = arith.constant 0 : index
    %c0_58 = arith.constant 0 : index
    %116 = vector.load %arg14[%c0_57, %c0_58] : memref<144x384xbf16, #tpu.memory_space<vmem>>, vector<16x384xbf16>
    tpu.vector_store %arg14[%c0_57, %c0_58], %115 {strides = array<i32>} : memref<144x384xbf16, #tpu.memory_space<vmem>>, vector<16x384xbf16>,
    %c18_i32_59 = arith.constant 18 : i32
    %117 = tpu.dynamic_rotate %112 by %c18_i32_59 dim 1 : vector<16x384xf32>, i32 -> vector<16x384xf32>
    %118 = arith.truncf %117 : vector<16x384xf32> to vector<16x384xbf16>
    %c16_60 = arith.constant 16 : index
    %c0_61 = arith.constant 0 : index
    %119 = vector.load %arg14[%c16_60, %c0_61] : memref<144x384xbf16, #tpu.memory_space<vmem>>, vector<16x384xbf16>
    tpu.vector_store %arg14[%c16_60, %c0_61], %118 {strides = array<i32>} : memref<144x384xbf16, #tpu.memory_space<vmem>>, vector<16x384xbf16>,
    %c17_i32_62 = arith.constant 17 : i32
    %120 = tpu.dynamic_rotate %112 by %c17_i32_62 dim 1 : vector<16x384xf32>, i32 -> vector<16x384xf32>
    %121 = arith.truncf %120 : vector<16x384xf32> to vector<16x384xbf16>
    %c32_63 = arith.constant 32 : index
    %c0_64 = arith.constant 0 : index
    %122 = vector.load %arg14[%c32_63, %c0_64] : memref<144x384xbf16, #tpu.memory_space<vmem>>, vector<16x384xbf16>
    tpu.vector_store %arg14[%c32_63, %c0_64], %121 {strides = array<i32>} : memref<144x384xbf16, #tpu.memory_space<vmem>>, vector<16x384xbf16>,
    %c1_i32_65 = arith.constant 1 : i32
    %123 = tpu.dynamic_rotate %112 by %c1_i32_65 dim 1 : vector<16x384xf32>, i32 -> vector<16x384xf32>
    %124 = arith.truncf %123 : vector<16x384xf32> to vector<16x384xbf16>
    %c48_66 = arith.constant 48 : index
    %c0_67 = arith.constant 0 : index
    %125 = vector.load %arg14[%c48_66, %c0_67] : memref<144x384xbf16, #tpu.memory_space<vmem>>, vector<16x384xbf16>
    tpu.vector_store %arg14[%c48_66, %c0_67], %124 {strides = array<i32>} : memref<144x384xbf16, #tpu.memory_space<vmem>>, vector<16x384xbf16>,
    %126 = arith.truncf %112 : vector<16x384xf32> to vector<16x384xbf16>
    %c64_68 = arith.constant 64 : index
    %c0_69 = arith.constant 0 : index
    %127 = vector.load %arg14[%c64_68, %c0_69] : memref<144x384xbf16, #tpu.memory_space<vmem>>, vector<16x384xbf16>
    tpu.vector_store %arg14[%c64_68, %c0_69], %126 {strides = array<i32>} : memref<144x384xbf16, #tpu.memory_space<vmem>>, vector<16x384xbf16>,
    %c383_i32_70 = arith.constant 383 : i32
    %128 = tpu.dynamic_rotate %112 by %c383_i32_70 dim 1 : vector<16x384xf32>, i32 -> vector<16x384xf32>
    %129 = arith.truncf %128 : vector<16x384xf32> to vector<16x384xbf16>
    %c80_71 = arith.constant 80 : index
    %c0_72 = arith.constant 0 : index
    %130 = vector.load %arg14[%c80_71, %c0_72] : memref<144x384xbf16, #tpu.memory_space<vmem>>, vector<16x384xbf16>
    tpu.vector_store %arg14[%c80_71, %c0_72], %129 {strides = array<i32>} : memref<144x384xbf16, #tpu.memory_space<vmem>>, vector<16x384xbf16>,
    %c367_i32_73 = arith.constant 367 : i32
    %131 = tpu.dynamic_rotate %112 by %c367_i32_73 dim 1 : vector<16x384xf32>, i32 -> vector<16x384xf32>
    %132 = arith.truncf %131 : vector<16x384xf32> to vector<16x384xbf16>
    %c96_74 = arith.constant 96 : index
    %c0_75 = arith.constant 0 : index
    %133 = vector.load %arg14[%c96_74, %c0_75] : memref<144x384xbf16, #tpu.memory_space<vmem>>, vector<16x384xbf16>
    tpu.vector_store %arg14[%c96_74, %c0_75], %132 {strides = array<i32>} : memref<144x384xbf16, #tpu.memory_space<vmem>>, vector<16x384xbf16>,
    %c366_i32_76 = arith.constant 366 : i32
    %134 = tpu.dynamic_rotate %112 by %c366_i32_76 dim 1 : vector<16x384xf32>, i32 -> vector<16x384xf32>
    %135 = arith.truncf %134 : vector<16x384xf32> to vector<16x384xbf16>
    %c112_77 = arith.constant 112 : index
    %c0_78 = arith.constant 0 : index
    %136 = vector.load %arg14[%c112_77, %c0_78] : memref<144x384xbf16, #tpu.memory_space<vmem>>, vector<16x384xbf16>
    tpu.vector_store %arg14[%c112_77, %c0_78], %135 {strides = array<i32>} : memref<144x384xbf16, #tpu.memory_space<vmem>>, vector<16x384xbf16>,
    %c365_i32_79 = arith.constant 365 : i32
    %137 = tpu.dynamic_rotate %112 by %c365_i32_79 dim 1 : vector<16x384xf32>, i32 -> vector<16x384xf32>
    %138 = arith.truncf %137 : vector<16x384xf32> to vector<16x384xbf16>
    %c128_80 = arith.constant 128 : index
    %c0_81 = arith.constant 0 : index
    %139 = vector.load %arg14[%c128_80, %c0_81] : memref<144x384xbf16, #tpu.memory_space<vmem>>, vector<16x384xbf16>
    tpu.vector_store %arg14[%c128_80, %c0_81], %138 {strides = array<i32>} : memref<144x384xbf16, #tpu.memory_space<vmem>>, vector<16x384xbf16>,
    %c0_82 = arith.constant 0 : index
    %c0_83 = arith.constant 0 : index
    %140 = vector.load %arg11[%c0_82, %c0_83] : memref<16x144xbf16, #tpu.memory_space<vmem>>, vector<16x144xbf16>
    %c0_84 = arith.constant 0 : index
    %c0_85 = arith.constant 0 : index
    %141 = vector.load %arg14[%c0_84, %c0_85] : memref<144x384xbf16, #tpu.memory_space<vmem>>, vector<144x384xbf16>
    %cst_86 = arith.constant dense<0.000000e+00> : vector<16x384xf32>
    %142 = tpu.matmul %140, %141, %cst_86 {dimension_numbers = #tpu.dot_dimension_numbers<[1], [0], [0], [1], [0, 0, 1, 1], [], []>} : vector<16x144xbf16>, vector<144x384xbf16>, vector<16x384xf32> -> vector<16x384xf32>
    %143 = vector.broadcast %113 : vector<16x1xf32> to vector<16x384xf32>
    %144 = arith.addf %142, %143 : vector<16x384xf32>
    %145 = arith.addf %144, %4 : vector<16x384xf32>
    %146 = vector.broadcast %0 : vector<1x384xf32> to vector<16x384xf32>
    %147 = arith.mulf %145, %146 : vector<16x384xf32>
    %c0_87 = arith.constant 0 : index
    %c0_88 = arith.constant 0 : index
    %c0_89 = arith.constant 0 : index
    %148 = vector.load %arg13[%c0_87, %c0_88, %c0_89] : memref<1x16x384xf32, #tpu.memory_space<vmem>>, vector<1x16x384xf32>
    %149 = vector.shape_cast %148 : vector<1x16x384xf32> to vector<16x384xf32>
    %150 = vector.shape_cast %147 : vector<16x384xf32> to vector<1x16x384xf32>
    tpu.vector_store %arg13[%c0_87, %c0_88, %c0_89], %150 {strides = array<i32>} : memref<1x16x384xf32, #tpu.memory_space<vmem>>, vector<1x16x384xf32>,
    return
  }
  func.func @transform_0(%arg0: i32) -> (i32, i32, i32) {
    %c0_i32 = arith.constant 0 : i32
    %c0_i32_0 = arith.constant 0 : i32
    %c0_i32_1 = arith.constant 0 : i32
    return %arg0, %c0_i32, %c0_i32_0 : i32, i32, i32
  }
  func.func @transform_1(%arg0: i32) -> (i32, i32) {
    %c0_i32 = arith.constant 0 : i32
    %c0_i32_0 = arith.constant 0 : i32
    %c0_i32_1 = arith.constant 0 : i32
    return %c0_i32, %c0_i32_0 : i32, i32
  }
  func.func @transform_2(%arg0: i32) -> (i32, i32) {
    %c0_i32 = arith.constant 0 : i32
    %c0_i32_0 = arith.constant 0 : i32
    %c0_i32_1 = arith.constant 0 : i32
    return %c0_i32, %c0_i32_0 : i32, i32
  }
  func.func @transform_3(%arg0: i32) -> (i32, i32) {
    %c0_i32 = arith.constant 0 : i32
    %c0_i32_0 = arith.constant 0 : i32
    %c0_i32_1 = arith.constant 0 : i32
    return %c0_i32, %c0_i32_0 : i32, i32
  }
  func.func @transform_4(%arg0: i32) -> (i32, i32) {
    %c0_i32 = arith.constant 0 : i32
    %c0_i32_0 = arith.constant 0 : i32
    %c0_i32_1 = arith.constant 0 : i32
    return %c0_i32, %c0_i32_0 : i32, i32
  }
  func.func @transform_5(%arg0: i32) -> (i32, i32) {
    %c0_i32 = arith.constant 0 : i32
    %c0_i32_0 = arith.constant 0 : i32
    %c0_i32_1 = arith.constant 0 : i32
    return %c0_i32, %c0_i32_0 : i32, i32
  }
  func.func @transform_6(%arg0: i32) -> (i32, i32) {
    %c0_i32 = arith.constant 0 : i32
    %c0_i32_0 = arith.constant 0 : i32
    %c0_i32_1 = arith.constant 0 : i32
    return %c0_i32, %c0_i32_0 : i32, i32
  }
  func.func @transform_7(%arg0: i32) -> (i32, i32) {
    %c0_i32 = arith.constant 0 : i32
    %c0_i32_0 = arith.constant 0 : i32
    %c0_i32_1 = arith.constant 0 : i32
    return %c0_i32, %c0_i32_0 : i32, i32
  }
  func.func @transform_8(%arg0: i32) -> (i32, i32) {
    %c0_i32 = arith.constant 0 : i32
    %c0_i32_0 = arith.constant 0 : i32
    %c0_i32_1 = arith.constant 0 : i32
    return %c0_i32, %c0_i32_0 : i32, i32
  }
  func.func @transform_9(%arg0: i32) -> (i32, i32) {
    %c0_i32 = arith.constant 0 : i32
    %c0_i32_0 = arith.constant 0 : i32
    %c0_i32_1 = arith.constant 0 : i32
    return %c0_i32, %c0_i32_0 : i32, i32
  }
  func.func @transform_10(%arg0: i32) -> (i32, i32) {
    %c0_i32 = arith.constant 0 : i32
    %c0_i32_0 = arith.constant 0 : i32
    %c0_i32_1 = arith.constant 0 : i32
    return %c0_i32, %c0_i32_0 : i32, i32
  }
  func.func @transform_11(%arg0: i32) -> (i32, i32) {
    %c0_i32 = arith.constant 0 : i32
    %c0_i32_0 = arith.constant 0 : i32
    %c0_i32_1 = arith.constant 0 : i32
    return %c0_i32, %c0_i32_0 : i32, i32
  }
  func.func @transform_12(%arg0: i32) -> (i32, i32, i32) {
    %c0_i32 = arith.constant 0 : i32
    %c0_i32_0 = arith.constant 0 : i32
    %c0_i32_1 = arith.constant 0 : i32
    return %arg0, %c0_i32, %c0_i32_0 : i32, i32, i32
  }
}

</mosaic_0001>

<bundles_post_ra>
// kernel: tpu_custom_call.1
= control target key start
LH: loop header
LB: loop body
LE: loop exit
PB: predicated region body
PF: predicated region fallthrough
CT: control target
= control target key end

     0   :  { %s4954_s0 = inlined_call_operand.vmem [shape: f32[2,16,384], index: 0, kind: input, shape index: {}]   ;;  %s4955_s1 = inlined_call_operand.hbm [shape: f32[1,384], index: 1, kind: input, shape index: {}]   ;;  %s4956_s2 = inlined_call_operand.hbm [shape: f32[8,16], index: 2, kind: input, shape index: {}]   ;;  %s4957_s3 = inlined_call_operand.vmem [shape: f32[16,8], index: 3, kind: input, shape index: {}]   ;;  %s4958_s4 = inlined_call_operand.vmem [shape: f32[16,1], index: 4, kind: input, shape index: {}]   ;;  %s4959_s5 = inlined_call_operand.vmem [shape: f32[16,1], index: 5, kind: input, shape index: {}]   ;;  %s4960_s6 = inlined_call_operand.vmem [shape: bf16[16,144], index: 6, kind: input, shape index: {}]   ;;  %s4961_s7 = inlined_call_operand.vmem [shape: f32[16,1], index: 7, kind: input, shape index: {}]   ;;  %s4962_s8 = inlined_call_operand.vmem [shape: f32[16,1], index: 8, kind: input, shape index: {}]   ;;  %s4963_s9 = inlined_call_operand.vmem [shape: f32[16,1], index: 9, kind: input, shape index: {}]   ;;  %s4964_s10 = inlined_call_operand.vmem [shape: bf16[16,144], index: 10, kind: input, shape index: {}]   ;;  %s4965_s11 = inlined_call_operand.vmem [shape: f32[16,1], index: 11, kind: input, shape index: {}]   ;;  %s4966_s12 = inlined_call_operand.hbm [shape: f32[2,16,384], index: 12, kind: output, shape index: {}]  }
   0x1   :  { %4986 = sst [smem:[#allocation12_spill]] %s4954_s0 }
   0x2   :  { %4987 = sst [smem:[#allocation13_spill]] %s4955_s1 }
   0x3   :  { %17 = vsyncpa [#allocation4], 0 }
   0x4   :  { %18 = vsyncpa [#allocation7], 0 }
   0x5   :  { %19 = vsyncpa [#allocation5], 0 }
   0x6   :  { %21 = vsyncpa [#allocation5 + $0x1], 0  ;;  %s4173_s21 = smov 0   ;;  %s4175_s22 = smov 0  }
   0x7   :  { %s4177_s23 = smov 0   ;;  %s4179_s24 = smov 0  }
   0x8 LB: > { %s4194_s25 = sadd.s32 4294967295, %s4090_s24   ;;  %s3265_s26 = sadd.s32 4294967294, %s4090_s24   ;;  %s4090_s24 = sphi %s4179_s24, %s5012_s24   ;;  %s4086_s23 = sphi %s4177_s23, %s5011_s23   ;;  %s4082_s22 = sphi %s4175_s22, %s5010_s22   ;;  %s4078_s21 = sphi %s4173_s21, %s5009_s21  }
   0x9   : > { %s4198_s27 = sadd.s32 1, %s4090_s24   ;;  %s291_s28 = sadd.s32 1, %s4086_s23 }
   0xa   : > { %s288_s29 = ssub.s32 %s4090_s24, %s4198_s27  ;;  %p301_p0 = scmp.ne.s32.totalorder %s4086_s23, %s4082_s22 }
   0xb   : > { %p289_p1 = scmp.eq.s32.totalorder %s288_s29, 0  ;;  %p302_p2 = scmp.eq.s32.totalorder %s4194_s25, 1 }
   0xc   : > { %p307_p3 = scmp.ne.s32.totalorder %s4082_s22, %s4078_s21  ;;  %p308_p4 = scmp.eq.s32.totalorder %s3265_s26, 1 }
   0xd   : > { %s4209_s30 = scalar_select %p289_p1, %s4086_s23, %s291_s28  }
   0xe   : > { %p4211_p5 = por %p302_p2, %p301_p0  ;;  %p4215_p6 = por %p308_p4, %p307_p3 }
   0xf   : > { %p3266_p7 = scmp.ge.s32.totalorder %s4090_s24, 1  ;;  %p315_p8 = scmp.lt.s32.totalorder %s4090_s24, 3 }
  0x10   : > { %s4988_s13 = scalar_select %p4211_p5, 1, 0 }
  0x11   : > { %s4989_s14 = scalar_select %p4215_p6, 1, 0 }
  0x12   : > { %p4967_p9 = scmp.eq.s32.totalorder %s4194_s25, 0  ;;  %p4222_p10 = pnand %p3266_p7, %p315_p8 }
  0x13   : > { %s4092_s16 = smov [#allocation3]   ;;  %s4093_s18 = smov [#allocation6]  }
  0x14   : > { %s4990_s15 = scalar_select %p4222_p10, 1, 0 }
  0x15   : > { %s328_s17 = sshll.u32 %s4092_s16, 4  ;;  %p3592_p11 = pneg %p4222_p10  ;;  %s329_s17 = int_to_ptr.vmem [resolvable:$true] %s328_s17 }
  0x16   : > { %s339_s19 = sshll.u32 %s4093_s18, 4  ;;  %s3981_s26 = scalar_lea.vmem %s329_s17, 48  ;;  %s340_s19 = int_to_ptr.vmem [resolvable:$true] %s339_s19 }
  0x17   : > { %p4230_p12 = pnand %p4967_p9, %p3592_p11  ;;  %p3982_p0 = scmp.ne.s32.totalorder %s329_s17, %s3981_s26 }
  0x18   : > { %s3988_s28 = scalar_lea.vmem %s329_s17, 64  ;;  %p3989_p3 = scmp.lt.s32.totalorder %s329_s17, %s329_s17 }
  0x19   : > { %p3972_p13 = pneg %p4230_p12  ;;  %p3990_p4 = scmp.lt.s32.totalorder %s3988_s28, %s3981_s26 }
  0x1b   : > { %p3984_p1 = pnand %p3982_p0, %p3972_p13  ;;  %p3991_p7 = por %p3990_p4, %p3989_p3 }
  0x1d   : > { %p3985_p2 = pneg %p3984_p1 }
  0x1f   : > { %p3992_p8 = pnand %p3991_p7, %p3985_p2 }
  0x21   : > { %3995 = shalt.err (!%p3992_p8)
}
  0x22   : > { %s4992_s1 = sld [smem:[#allocation13_spill]]  ;;  %s4007_s18 = scalar_lea.vmem %s340_s19, 128 }
  0x23   : > { %p4008_p11 = scmp.ne.s32.totalorder %s340_s19, %s4007_s18  ;;  %p4015_p1 = scmp.lt.s32.totalorder %s340_s19, %s340_s19 }
  0x24   : > { %p4016_p6 = scmp.lt.s32.totalorder %s4007_s18, %s4007_s18 }
  0x25   : > { %p4010_p9 = pnand %p4008_p11, %p3972_p13 }
  0x26   : > { %p4017_p5 = por %p4016_p6, %p4015_p1 }
  0x27   : > { %p4011_p0 = pneg %p4010_p9 }
  0x28   : > { %3595 = dma.hbm_to_vmem [thread:$0]  (!%p4230_p12), %s4992_s1, 48, %s329_s17, [#allocation4]  }
  0x29   : > { %p4018_p10 = pnand %p4017_p5, %p4011_p0 }
  0x2b   : > { %4021 = shalt.err (!%p4018_p10)
}
  0x2c   : > { %3598 = dma.hbm_to_vmem [thread:$0]  (!%p4230_p12), %s4956_s2, 128, %s340_s19, [#allocation7]  }
  0x2d   : > { %p4993_p2 = scmp.ne.s32.totalorder %s4990_s15, 0 }
  0x2e   : > { %p4994_p3 = scmp.eq.s32.totalorder (!%p4993_p2), %s4194_s25, 0 }
  0x2f   : > { %387 = sbr.rel (%p4993_p2) target bundleno = 2004 (0x7d4), region = 68 }
  0x34   : > { %4065 = dma.done.wait (%p4994_p3), [#allocation4], 48   ;;  %p4995_p13 = pmov %p4994_p3 }
  0x35   : > { %p4996_p9 = pmov %p4994_p3 }
  0x36   : > { %4067 = vsyncadd (%p4995_p13), [#allocation4], 4294967248 }
  0x37   : > { %4069 = dma.done.wait (%p4996_p9), [#allocation7], 128   ;;  %p4997_p5 = pmov %p4994_p3 }
  0x38   : > { %p433_p6 = scmp.lt.s32.totalorder %s4194_s25, 1  ;;  %v4094_v0 = vmov 0.0   ;;  %vm4095_vm0 = vmmov 0   ;;  %s4998_s0 = sld [smem:[#allocation12_spill]]  ;;  %v440_v6 = vld [vmem:[#allocation6] sm:$0xff]  ;;  %vm453_vm1 = vcmask 130048   ;;  %v1134_v45 = vlaneseq }
  0x39   : > { %4071 = vsyncadd (%p4997_p5), [#allocation7], 4294967168  ;;  %3531 = vmatprep.subr.mxu1 %v4094_v0  ;;  %521 = vmatprep.mubr.f32.mxu0 %v4094_v0  ;;  %v4323_v26 = vld [vmem:[%s4957_s3] sm:$0xff]  ;;  %vm760_vm2 = vcmask 64512   ;;  %v4096_v28 = vmov 0   ;;  %v450_v30 = vld [vmem:[%s4958_s4 + $0x8] sm:$0xff] }
  0x3a   : > { %s434_s15 = scalar_select %p433_p6, %s4194_s25, 1  ;;  %3535 = vmatprep.mubr.msk.f32.mxu1 %vm4095_vm0, %v4094_v0  ;;  %v449_v27 = vld [vmem:[%s4958_s4] sm:$0xff]  ;;  %3655 = vset.pattern.permute.xlu1 %v4096_v28  ;;  %v452_v31 = vld [vmem:[%s4959_s5 + $0x8] sm:$0xff]  ;;  %v1135_v48 = vshrl.u32 %v1134_v45, 7  ;;  %v439_v57 = vld [vmem:[#allocation3] sm:$0x7] }
  0x3b   : > { %3656 = vset.pattern.permute.xlu0 %v4096_v28  ;;  %v451_v29 = vld [vmem:[%s4959_s5] sm:$0xff]  ;;  %1079 = vperm.xlu1 %3655, %v449_v27   ;;  %v4344_v35 = vld [vmem:[%s4957_s3 + $0x8] sm:$0xff]  ;;  %s4984_s19 = smov 111   ;;  %s4982_s20 = smov 127  }
  0x3c   : > { %s3580_s17 = smul.u32 48, %s434_s15  ;;  %v1144_v54 = vsub.s32 2, %v1135_v48  ;;  %v1136_v63 = vsub.s32 0, %v1135_v48  ;;  %s4970_s15 = smov 17  }
  0x3d   : > { %s4974_s16 = smov 1   ;;  %s4972_s18 = smov 19  }
  0x3e   : > { %s4271_s29 = scalar_lea.vmem %s4998_s0, %s3580_s17  ;;  %s4976_s17 = smov 110  }
  0x3f   : > { %v4274_v1 = vld [vmem:[%s4271_s29 + $0x20] sm:$0xff]  ;;  %v4277_v2 = vld [vmem:[%s4271_s29 + $0x18] sm:$0xff]  ;;  %v4280_v3 = vld [vmem:[%s4271_s29 + $0x8] sm:$0xff]  ;;  %1084 = vperm.xlu1 %3655, %v450_v30   ;;  %s4980_s26 = smov 18   ;;  %s4978_s28 = smov 109  }
  0x40   : > { %485 = vmatprep.subr.mxu0 %v4274_v1  ;;  %v4284_v4 = vld [vmem:[%s4271_s29] sm:$0xff]  ;;  %v4287_v5 = vld [vmem:[%s4271_s29 + $0x28] sm:$0xff]  ;;  %v602_v7 = vmul.f32 %v4274_v1, %v4274_v1  ;;  %v4294_v8 = vld [vmem:[%s4271_s29 + $0x10] sm:$0xff]  ;;  %v601_v9 = vmul.f32 %v4277_v2, %v4277_v2  ;;  %v599_v10 = vmul.f32 %v4280_v3, %v4280_v3  ;;  %s5000_s1 = smov 19   ;;  %s5005_s0 = smov 18  }
  0x41   : > { %486 = vmatpush1.msra.mxu0 %v4277_v2  ;;  %3532 = vmatpush3.msra.mxu1 %v4287_v5  ;;  %v598_v11 = vmul.f32 %v4284_v4, %v4284_v4  ;;  %v603_v12 = vmul.f32 %v4287_v5, %v4287_v5  ;;  %v600_v13 = vmul.f32 %v4294_v8, %v4294_v8  ;;  %p5007_p12 = scmp.ne.s32.totalorder %s4988_s13, 0 }
  0x42   : > { %487 = vmatprep.subr.mxu0 %v4280_v3  ;;  %3533 = vmatprep.subr.mxu1 %v4094_v0 }
  0x43   : > { %488 = vmatpush1.msra.mxu0 %v4284_v4  ;;  %3534 = vmatpush3.msra.mxu1 %v4294_v8 }
  0x44   : > { %3274 = vmatmul.mubr.msk.f32.vlgmr.msra.gmra.mxu0 %vm453_vm1, %v440_v6  ;;  %632 = vmatprep.subr.mxu0 %v602_v7 }
  0x45   : > { %633 = vmatpush1.msra.mxu0 %v601_v9  ;;  %3536 = vmatmul.mubr.msk.f32.vlgmr.msra.gmra.mxu1 %vm453_vm1, %v440_v6 }
  0x46   : > { %634 = vmatprep.subr.mxu0 %v599_v10  ;;  %3538 = vmatprep.subr.mxu1 %v4094_v0 }
  0x47   : > { %635 = vmatpush1.msra.mxu0 %v598_v11  ;;  %668 = vmatprep.mubr.f32.mxu0 %v4094_v0 }
  0x48   : > { %3539 = vmatpush3.msra.mxu1 %v603_v12  ;;  %3276 = vmatmul.mubr.msk.f32.vlgmr.msra.gmra.mxu0 %vm453_vm1, %v440_v6 }
  0x49   : > { %3540 = vmatprep.subr.mxu1 %v4094_v0  ;;  %3542 = vmatprep.mubr.msk.f32.mxu1 %vm4095_vm0, %v4094_v0 }
  0x4a   : > { %3541 = vmatpush3.msra.mxu1 %v600_v13  ;;  %831 = vmatprep.mubr.f32.mxu0 %v4094_v0 }
  0x4b   : > { %3543 = vmatmul.mubr.msk.f32.vlgmr.msra.gmra.mxu1 %vm453_vm1, %v440_v6  ;;  %1106 = vperm.xlu1 %3655, %v452_v31   ;;  %v1140_v6 = vsub.s32 1, %v1135_v48 }
  0x4c   : > { %3547 = vmatprep.mubr.msk.f32.mxu1 %vm760_vm2, %v4323_v26 }
  0xb6   : > { %v1080_v43 = vpop.permute.xlu1 %1079 }
  0xba   : > { %v1085_v49 = vpop.permute.xlu1 %1084 }
  0xc6   : > { %v1107_v13 = vpop.permute.xlu1 %1106 }
 0x104   : > { %v523_v14 = vpop.f32.mrf.mxu0 }
 0x105   : > { %v594_v15 = vpop.f32.mrf.mxu1 }
 0x106   : > { %v525_v16 = vpop.f32.mrf.mxu0 }
 0x107   : > { %v745_v17 = vadd.f32 %v525_v16, %v523_v14  ;;  %v3537_v18 = vpop.f32.mrf.mxu1 }
 0x108   : > { %v670_v19 = vpop.f32.mrf.mxu0  ;;  %v4373_v18 = vrot.slane %v439_v57, %v1136_v63 }
 0x109   : > { %v746_v20 = vadd.f32 %v745_v17, %v594_v15 }
 0x10a   : > { %v672_v21 = vpop.f32.mrf.mxu0 }
 0x10b   : > { %v749_v22 = vadd.f32 %v672_v21, %v670_v19  ;;  %v741_v23 = vpop.f32.mrf.mxu1  ;;  %747 = vadd.xlane.f32.xlu0 %v746_v20  ;;  %v4375_v20 = vrot.slane %v439_v57, %v1140_v6  ;;  %v4445_v6 = vand.u32 127, %v1134_v45 }
 0x10d   : > { %v750_v24 = vadd.f32 %v749_v22, %v741_v23  ;;  %v3544_v25 = vpop.f32.mrf.mxu1  ;;  %vm1300_vm9 = vcmp.lt.s32.totalorder %v4445_v6, 1  ;;  %vm1453_vm10 = vcmp.lt.s32.totalorder %v4445_v6, 110  ;;  %vm1410_vm11 = vcmp.lt.s32.totalorder %v4445_v6, 111 }
 0x10e   : > { %vm1367_vm12 = vcmp.lt.s32.totalorder %v4445_v6, 127  ;;  %vm1257_vm13 = vcmp.lt.s32.totalorder %v4445_v6, 17  ;;  %vm1214_vm14 = vcmp.lt.s32.totalorder %v4445_v6, 18  ;;  %vm1171_vm15 = vcmp.lt.s32.totalorder %v4445_v6, 19 }
 0x10f   : > { %751 = vadd.xlane.f32.xlu0 %v750_v24 }
 0x125   : > { %1101 = vperm.xlu0 %3656, %v451_v29  }
 0x194   : > { %v748_v32 = vpop.xlane.xlu0 %747 }
 0x195   : > { %v754_v33 = vmul.f32 0.001953125, %v748_v32 }
 0x197   : > { %797 = vmatprep.subr.mxu0 %v754_v33  ;;  %3545 = vmatprep.subr.mxu1 %v754_v33  ;;  %v756_v36 = vmul.f32 %v754_v33, %v754_v33 }
 0x198   : > { %798 = vmatpush1.msra.mxu0 %v754_v33  ;;  %3546 = vmatpush3.msra.mxu1 %v754_v33  ;;  %v752_v34 = vpop.xlane.xlu0 %751 }
 0x199   : > { %v755_v37 = vmul.f32 0.001953125, %v752_v34  ;;  %3278 = vmatmul.mubr.msk.f32.vlgmr.msra.gmra.mxu0 %vm760_vm2, %v4323_v26  ;;  %3548 = vmatmul.mubr.msk.f32.vlgmr.msra.gmra.mxu1 %vm760_vm2, %v4344_v35 }
 0x19a   : > { %837 = vmatprep.mubr.f32.mxu0 %v4094_v0  ;;  %983 = vmatprep.mubr.f32.mxu1 %v4094_v0 }
 0x19b   : > { %v757_v38 = vsub.f32 %v755_v37, %v756_v36 }
 0x19d   : > { %v758_v39 = vadd.f32 1e-05, %v757_v38  ;;  %3279 = vmatmul.mubr.msk.f32.gmra.mxu0 %vm760_vm2, %v4344_v35 }
 0x19e   : > { %3552 = vmatprep.mubr.msk.f32.mxu0 %vm760_vm2, %v4323_v26 }
 0x19f   : > { %3921 = vrsqrt.f32 %v758_v39 }
 0x1a0   : > { %v1102_v11 = vpop.permute.xlu0 %1101 }
 0x1ac   : > { %v3922_v40 = vpop.eup %3921 }
 0x1ad   : > { %949 = vmatprep.subr.mxu1 %v3922_v40  ;;  %3550 = vmatprep.subr.mxu0 %v3922_v40 }
 0x1ae   : > { %950 = vmatpush1.msra.mxu1 %v3922_v40  ;;  %3551 = vmatpush3.msra.mxu0 %v3922_v40 }
 0x1af   : > { %3282 = vmatmul.mubr.msk.f32.vlgmr.msra.gmra.mxu1 %vm760_vm2, %v4323_v26  ;;  %3553 = vmatmul.mubr.msk.f32.vlgmr.msra.gmra.mxu0 %vm760_vm2, %v4344_v35 }
 0x1b0   : > { %989 = vmatprep.mubr.f32.mxu1 %v4094_v0  ;;  %1774 = vmatprep.subr.bf16.mxu0 %v4096_v28 }
 0x1b3   : > { %3283 = vmatmul.mubr.msk.f32.gmra.mxu1 %vm760_vm2, %v4344_v35 }
 0x259   : > { %v833_v41 = vpop.f32.mrf.mxu0  ;;  %v3549_v44 = vpop.f32.mrf.mxu1 }
 0x25a   : > { %v1076_v51 = vsub.f32 %v4287_v5, %v3549_v44  ;;  %v1071_v55 = vsub.f32 %v4284_v4, %v833_v41  ;;  %v4370_v4 = vrot.slane %v439_v57, %v1144_v54  ;;  %v3906_v57 = vld [vmem:[%s4960_s6 + $0x4] ss:$8 sps:$4 sm:$0xff]  }
 0x25b   : > { %v835_v42 = vpop.f32.mrf.mxu0  ;;  %v910_v47 = vpop.f32.mrf.mxu1  ;;  %3352 = vmatprep.mubr.msk.bf16.mxu0 %vm453_vm1, %v3906_v57  ;;  %3351 = vmatprep.mubr.msk.bf16.mxu1 %vm453_vm1, %v3906_v57 }
 0x25c   : > { %v1072_v59 = vsub.f32 %v4280_v3, %v835_v42  ;;  %v1073_v60 = vsub.f32 %v4294_v8, %v910_v47 }
 0x25d   : > { %v839_v46 = vpop.f32.mrf.mxu0 }
 0x25e   : > { %v1074_v12 = vsub.f32 %v4277_v2, %v839_v46 }
 0x25f   : > { %v841_v50 = vpop.f32.mrf.mxu0 }
 0x260   : > { %v1075_v8 = vsub.f32 %v4274_v1, %v841_v50 }
 0x26f   : > { %v985_v52 = vpop.f32.mrf.mxu1  ;;  %v3554_v53 = vpop.f32.mrf.mxu0 }
 0x270   : > { %v1087_v56 = vmul.f32 %v1080_v43, %v985_v52  ;;  %v1092_v58 = vmul.f32 %v3554_v53, %v1085_v49 }
 0x271   : > { %v987_v61 = vpop.f32.mrf.mxu1  ;;  %v1062_v62 = vpop.f32.mrf.mxu0 }
 0x272   : > { %v1093_v7 = vmul.f32 %v1087_v56, %v1071_v55  ;;  %v1098_v9 = vmul.f32 %v1092_v58, %v1076_v51  ;;  %v1088_v10 = vmul.f32 %v1080_v43, %v987_v61  ;;  %v1089_v5 = vmul.f32 %v1080_v43, %v1062_v62  ;;  %v1156_v56 = vld [vmem:[%s4961_s7 + $0x8] sm:$0xff]  ;;  %v1155_v58 = vld [vmem:[%s4961_s7] sm:$0xff] }
 0x273   : > { %v991_v14 = vpop.f32.mrf.mxu1 }
 0x274   : > { %v1114_v15 = vadd.f32 %v1107_v13, %v1098_v9  ;;  %v1094_v16 = vmul.f32 %v1088_v10, %v1072_v59  ;;  %v1095_v3 = vmul.f32 %v1089_v5, %v1073_v60  ;;  %v1090_v17 = vmul.f32 %v1085_v49, %v991_v14 }
 0x275   : > { %v1109_v19 = vadd.f32 %v1102_v11, %v1093_v7  ;;  %v993_v21 = vpop.f32.mrf.mxu1 }
 0x276   : > { %vm1120_vm3 = vcmp.gt.f32.partialorder %v1114_v15, 0.0  ;;  %v1126_v22 = vmul.f32 0.01, %v1114_v15  ;;  %v1096_v23 = vmul.f32 %v1090_v17, %v1074_v12  ;;  %v1110_v2 = vadd.f32 %v1102_v11, %v1094_v16 }
 0x277   : > { %v1111_v24 = vadd.f32 %v1102_v11, %v1095_v3  ;;  %vm1115_vm4 = vcmp.gt.f32.partialorder %v1109_v19, 0.0  ;;  %v1121_v25 = vmul.f32 0.01, %v1109_v19  ;;  %v1091_v27 = vmul.f32 %v1085_v49, %v993_v21 }
 0x278   : > { %v1132_v29 = vsel %vm1120_vm3, %v1114_v15, %v1126_v22  ;;  %v1112_v30 = vadd.f32 %v1107_v13, %v1096_v23  ;;  %vm1116_vm5 = vcmp.gt.f32.partialorder %v1110_v2, 0.0  ;;  %v1122_v31 = vmul.f32 0.01, %v1110_v2 }
 0x279   : > { %v1154_v1 = vmul.f32 %v4370_v4, %v1132_v29  ;;  %vm1117_vm6 = vcmp.gt.f32.partialorder %v1111_v24, 0.0  ;;  %v1123_v32 = vmul.f32 0.01, %v1111_v24  ;;  %v1127_v33 = vsel %vm1115_vm4, %v1109_v19, %v1121_v25 }
 0x27a   : > { %vm1118_vm7 = vcmp.gt.f32.partialorder %v1112_v30, 0.0  ;;  %v1124_v34 = vmul.f32 0.01, %v1112_v30  ;;  %v1128_v36 = vsel %vm1116_vm5, %v1110_v2, %v1122_v31  ;;  %v4379_v38 = vmul.f32 %v4373_v18, %v1127_v33 }
 0x27b   : > { %v1129_v37 = vsel %vm1117_vm6, %v1111_v24, %v1123_v32  ;;  %v4382_v39 = vmul.f32 %v4375_v20, %v1128_v36  ;;  %v1097_v40 = vmul.f32 %v1091_v27, %v1075_v8  ;;  %v3454_v43 = vpack.c.bf16 %v1154_v1, %v1154_v1 }
 0x27c   : > { %v1130_v41 = vsel %vm1118_vm7, %v1112_v30, %v1124_v34  ;;  %v1151_v42 = vmul.f32 %v4370_v4, %v1129_v37  ;;  %vm1496_vm3 = vcmp.lt.s32.totalorder %v4445_v6, 109  ;;  %v3920_v6 = vld [vmem:[%s4964_s10] ss:$8 sps:$4 sm:$0xff]  }
 0x27d   : > { %v1113_v44 = vadd.f32 %v1107_v13, %v1097_v40  ;;  %v4386_v46 = vmul.f32 %v4373_v18, %v1130_v41  ;;  %1354 = vst [vmem:[#allocation2 + $0x74] sm:$0xf] %v3454_v43 }
 0x27e   : > { %v3677_v47 = vpack.i.bf16 %v1154_v1, %v1151_v42  ;;  %v3452_v52 = vpack.c.bf16 %v1151_v42, %v1151_v42 }
 0x27f   : > { %vm1119_vm8 = vcmp.gt.f32.partialorder %v1113_v44, 0.0  ;;  %v1125_v48 = vmul.f32 0.01, %v1113_v44  ;;  %v3702_v51 = vpack.i.bf16 %v4386_v46, %v4379_v38  ;;  %v3935_v55 = vpack.c.bf16 %v4386_v46, %v4379_v38 }
 0x280   : > { %3678 = vrot.lane.b32.xlu0 %v3677_v47, %s4970_s15  ;;  %3658 = vrot.lane.b32.xlu1 %v3677_v47, %s4976_s17  ;;  %1352 = vst [vmem:[#allocation2 + $0x68] sm:$0xf] %v3452_v52 }
 0x281   : > { %v1131_v49 = vsel %vm1119_vm8, %v1113_v44, %v1125_v48 }
 0x282   : > { %v4391_v50 = vmul.f32 %v4375_v20, %v1131_v49 }
 0x284   : > { %3663 = vrot.lane.b32.xlu1 %v3677_v47, %s4984_s19  ;;  %3703 = vrot.lane.b32.xlu0 %v3702_v51, %s4970_s15  ;;  %v3732_v53 = vpack.i.bf16 %v4391_v50, %v4382_v39  ;;  %v3934_v54 = vpack.c.bf16 %v4391_v50, %v4382_v39  ;;  %s5006_s15 = smov 109  }
 0x288   : > { %3668 = vrot.lane.b32.xlu1 %v3677_v47, %s4982_s20  ;;  %3733 = vrot.lane.b32.xlu0 %v3732_v53, %s4974_s16 }
 0x28c   : > { %3673 = vrot.lane.b32.xlu1 %v3677_v47, %s4974_s16  ;;  %3738 = vrot.lane.b32.xlu0 %v3702_v51, %s4972_s18 }
 0x290   : > { %3748 = vrot.lane.b32.xlu0 %v3732_v53, %s4980_s26  ;;  %3683 = vrot.lane.b32.xlu1 %v3702_v51, %s4976_s17 }
 0x294   : > { %3753 = vrot.lane.b32.xlu0 %v3677_v47, %s4972_s18  ;;  %3688 = vrot.lane.b32.xlu1 %v3702_v51, %s4984_s19  ;;  %s4999_s18 = smov 17  }
 0x298   : > { %3768 = vrot.lane.b32.xlu0 %v3732_v53, %s4978_s28  ;;  %3693 = vrot.lane.b32.xlu1 %v3702_v51, %s4982_s20 }
 0x29c   : > { %1572 = vperm.xlu0 %3656, %v1156_v56   ;;  %3698 = vrot.lane.b32.xlu1 %v3702_v51, %s4974_s16  ;;  %s5004_s16 = smov 1  }
 0x2a0   : > { %3708 = vrot.lane.b32.xlu1 %v3732_v53, %s4976_s17  ;;  %s5003_s17 = smov 127  }
 0x2a4   : > { %3713 = vrot.lane.b32.xlu1 %v3732_v53, %s4984_s19 }
 0x2a8   : > { %3718 = vrot.lane.b32.xlu1 %v3732_v53, %s4982_s20 }
 0x2ac   : > { %3723 = vrot.lane.b32.xlu1 %v3702_v51, %s4980_s26 }
 0x2b0   : > { %3728 = vrot.lane.b32.xlu1 %v3677_v47, %s4980_s26  ;;  %s5001_s26 = smov 111  }
 0x2b4   : > { %3743 = vrot.lane.b32.xlu1 %v3732_v53, %s4999_s18 }
 0x2b8   : > { %3758 = vrot.lane.b32.xlu1 %v3702_v51, %s4978_s28 }
 0x2bc   : > { %3763 = vrot.lane.b32.xlu1 %v3732_v53, %s5000_s1 }
 0x2c0   : > { %3773 = vrot.lane.b32.xlu1 %v3677_v47, %s4978_s28  ;;  %s5002_s28 = smov 110  }
 0x2c4   : > { %1567 = vperm.xlu1 %3655, %v1155_v58  }
 0x2f2   : > { %v4434_v59 = vpop.permute.xlu0 %3678  ;;  %v4436_v60 = vpop.permute.xlu1 %3658 }
 0x2f3   : > { %v3661_v3 = vunpack.i.h.bf16 %v4436_v60  ;;  %v3660_v17 = vunpack.i.l.bf16 %v4436_v60 }
 0x2f6   : > { %v4438_v61 = vpop.permute.xlu1 %3663  ;;  %v4440_v62 = vpop.permute.xlu0 %3703 }
 0x2f7   : > { %v3666_v25 = vunpack.i.h.bf16 %v4438_v61  ;;  %v3665_v27 = vunpack.i.l.bf16 %v4438_v61 }
 0x2fa   : > { %v4442_v63 = vpop.permute.xlu1 %3668  ;;  %v4447_v7 = vpop.permute.xlu0 %3733 }
 0x2fb   : > { %v3736_v10 = vunpack.i.h.bf16 %v4447_v7  ;;  %v3735_v5 = vunpack.i.l.bf16 %v4447_v7  ;;  %v3671_v36 = vunpack.i.h.bf16 %v4442_v63  ;;  %v3670_v37 = vunpack.i.l.bf16 %v4442_v63 }
 0x2fc   : > { %v3705_v7 = vunpack.i.l.bf16 %v4440_v62 }
 0x2fe   : > { %v4450_v9 = vpop.permute.xlu1 %3673 }
 0x2ff   : > { %v3676_v11 = vunpack.i.h.bf16 %v4450_v9  ;;  %v3675_v12 = vunpack.i.l.bf16 %v4450_v9 }
 0x301   : > { %v1301_v45 = vsel %vm1300_vm9, %v3735_v5, %v3675_v12  ;;  %v1302_v13 = vsel %vm1300_vm9, %v3736_v10, %v3676_v11 }
 0x302   : > { %v3448_v14 = vpack.c.bf16 %v1301_v45, %v1301_v45  ;;  %v3450_v15 = vpack.c.bf16 %v1302_v13, %v1302_v13  ;;  %v3684_v16 = vpop.permute.xlu1 %3683 }
 0x303   : > { %v3686_v8 = vunpack.i.h.bf16 %v3684_v16  ;;  %v3685_v19 = vunpack.i.l.bf16 %v3684_v16 }
 0x304   : > { %1328 = vst [vmem:[#allocation2 + $0x50] sm:$0xf] %v3448_v14  ;;  %1330 = vst [vmem:[#allocation2 + $0x5c] sm:$0xf] %v3450_v15 }
 0x305   : > { %v1459_v21 = vsel %vm1453_vm10, %v3661_v3, %v3686_v8  ;;  %v1458_v22 = vsel %vm1453_vm10, %v3660_v17, %v3685_v19 }
 0x306   : > { %v3466_v23 = vpack.c.bf16 %v1459_v21, %v1459_v21  ;;  %v3464_v2 = vpack.c.bf16 %v1458_v22, %v1458_v22  ;;  %v3689_v24 = vpop.permute.xlu1 %3688  ;;  %v4499_v21 = vpop.permute.xlu0 %3738 }
 0x307   : > { %v3691_v29 = vunpack.i.h.bf16 %v3689_v24  ;;  %v3690_v30 = vunpack.i.l.bf16 %v3689_v24 }
 0x308   : > { %1483 = vst [vmem:[#allocation2 + $0xbc] sm:$0xf] %v3466_v23  ;;  %1481 = vst [vmem:[#allocation2 + $0xb0] sm:$0xf] %v3464_v2 }
 0x309   : > { %v1416_v31 = vsel %vm1410_vm11, %v3666_v25, %v3691_v29  ;;  %v1415_v1 = vsel %vm1410_vm11, %v3665_v27, %v3690_v30 }
 0x30a   : > { %v3462_v32 = vpack.c.bf16 %v1416_v31, %v1416_v31  ;;  %v3460_v33 = vpack.c.bf16 %v1415_v1, %v1415_v1  ;;  %v3694_v34 = vpop.permute.xlu1 %3693  ;;  %v3900_v1 = vld [vmem:[#allocation2 + $0x68] ss:$12 sps:$4 sm:$0xff]  }
 0x30b   : > { %v3696_v40 = vunpack.i.h.bf16 %v3694_v34  ;;  %v3695_v41 = vunpack.i.l.bf16 %v3694_v34 }
 0x30c   : > { %1440 = vst [vmem:[#allocation2 + $0xa4] sm:$0xf] %v3462_v32  ;;  %1438 = vst [vmem:[#allocation2 + $0x98] sm:$0xf] %v3460_v33 }
 0x30d   : > { %v1373_v42 = vsel %vm1367_vm12, %v3671_v36, %v3696_v40  ;;  %v1372_v43 = vsel %vm1367_vm12, %v3670_v37, %v3695_v41 }
 0x30e   : > { %v3458_v44 = vpack.c.bf16 %v1373_v42, %v1373_v42  ;;  %v3456_v47 = vpack.c.bf16 %v1372_v43, %v1372_v43  ;;  %v3699_v48 = vpop.permute.xlu1 %3698  ;;  %v3749_v42 = vpop.permute.xlu0 %3748  ;;  %v3901_v43 = vld [vmem:[#allocation2 + $0x50] ss:$12 sps:$4 sm:$0xff]  }
 0x30f   : > { %v3897_v49 = vld [vmem:[#allocation2 + $0xb0] ss:$12 sps:$4 sm:$0xff]   ;;  %v3701_v23 = vunpack.i.h.bf16 %v3699_v48  ;;  %v3700_v2 = vunpack.i.l.bf16 %v3699_v48  ;;  %v3681_v48 = vunpack.i.h.bf16 %v4434_v59 }
 0x310   : > { %1397 = vst [vmem:[#allocation2 + $0x8c] sm:$0xf] %v3458_v44  ;;  %1395 = vst [vmem:[#allocation2 + $0x80] sm:$0xf] %v3456_v47  ;;  %1775 = vmatpush1.bf16.msra.mxu0 %v3897_v49  ;;  %v3706_v44 = vunpack.i.h.bf16 %v4440_v62 }
 0x311   : > { %1776 = vmatprep.subr.bf16.mxu0 %v4096_v28 }
 0x312   : > { %v3709_v51 = vpop.permute.xlu1 %3708  ;;  %v3754_v62 = vpop.permute.xlu0 %3753 }
 0x313   : > { %v3711_v52 = vunpack.i.h.bf16 %v3709_v51  ;;  %v3710_v53 = vunpack.i.l.bf16 %v3709_v51  ;;  %v3898_v56 = vld [vmem:[#allocation2 + $0x98] ss:$12 sps:$4 sm:$0xff]  }
 0x314   : > { %1777 = vmatpush1.bf16.msra.mxu0 %v3898_v56  ;;  %v1263_v56 = vsel %vm1257_vm13, %v3681_v48, %v3706_v44 }
 0x315   : > { %v1455_v57 = vsel %vm1453_vm10, %v3711_v52, %v3661_v3  ;;  %v1454_v58 = vsel %vm1453_vm10, %v3710_v53, %v3660_v17  ;;  %v1456_v60 = vsel %vm1453_vm10, %v3685_v19, %v3710_v53  ;;  %v1457_v61 = vsel %vm1453_vm10, %v3686_v8, %v3711_v52  ;;  %1778 = vmatprep.subr.bf16.mxu0 %v4096_v28 }
 0x316   : > { %v3714_v63 = vpop.permute.xlu1 %3713  ;;  %v3936_v15 = vpack.c.bf16 %v1455_v57, %v1454_v58  ;;  %v3937_v16 = vpack.c.bf16 %v1457_v61, %v1456_v60  ;;  %v3680_v53 = vunpack.i.l.bf16 %v4434_v59 }
 0x317   : > { %v3716_v45 = vunpack.i.h.bf16 %v3714_v63  ;;  %v3715_v13 = vunpack.i.l.bf16 %v3714_v63  ;;  %v3899_v14 = vld [vmem:[#allocation2 + $0x80] ss:$12 sps:$4 sm:$0xff]  }
 0x318   : > { %1779 = vmatpush1.bf16.msra.mxu0 %v3899_v14  ;;  %1731 = vmatprep.subr.bf16.mxu1 %v3936_v15  ;;  %v1262_v61 = vsel %vm1257_vm13, %v3680_v53, %v3705_v7 }
 0x319   : > { %v1412_v3 = vsel %vm1410_vm11, %v3716_v45, %v3666_v25  ;;  %v1411_v17 = vsel %vm1410_vm11, %v3715_v13, %v3665_v27  ;;  %v1413_v8 = vsel %vm1410_vm11, %v3690_v30, %v3715_v13  ;;  %v1414_v19 = vsel %vm1410_vm11, %v3691_v29, %v3716_v45  ;;  %1780 = vmatprep.subr.bf16.mxu0 %v4096_v28 }
 0x31a   : > { %v3719_v22 = vpop.permute.xlu1 %3718  ;;  %1732 = vmatpush1.bf16.msra.mxu1 %v3937_v16  ;;  %v3938_v25 = vpack.c.bf16 %v1412_v3, %v1411_v17  ;;  %v3939_v32 = vpack.c.bf16 %v1414_v19, %v1413_v8  ;;  %v3755_v16 = vunpack.i.l.bf16 %v3754_v62 }
 0x31b   : > { %v3721_v24 = vunpack.i.h.bf16 %v3719_v22  ;;  %v3720_v31 = vunpack.i.l.bf16 %v3719_v22 }
 0x31c   : > { %1781 = vmatpush1.bf16.msra.mxu0 %v3900_v1  ;;  %1733 = vmatprep.subr.bf16.mxu1 %v3938_v25  ;;  %v3945_v1 = vpack.c.bf16 %v1263_v56, %v1262_v61  ;;  %v3741_v25 = vunpack.i.h.bf16 %v4499_v21 }
 0x31d   : > { %v1369_v27 = vsel %vm1367_vm12, %v3721_v24, %v3671_v36  ;;  %v1368_v30 = vsel %vm1367_vm12, %v3720_v31, %v3670_v37  ;;  %v1370_v29 = vsel %vm1367_vm12, %v3695_v41, %v3720_v31  ;;  %v1371_v33 = vsel %vm1367_vm12, %v3696_v40, %v3721_v24  ;;  %1782 = vmatprep.subr.bf16.mxu0 %v4096_v28  ;;  %v3769_v24 = vpop.permute.xlu0 %3768 }
 0x31e   : > { %v3724_v34 = vpop.permute.xlu1 %3723  ;;  %v1304_v36 = vsel %vm1300_vm9, %v3701_v23, %v3736_v10  ;;  %v1306_v37 = vsel %vm1300_vm9, %v3676_v11, %v3701_v23  ;;  %v1303_v40 = vsel %vm1300_vm9, %v3700_v2, %v3735_v5  ;;  %v1305_v41 = vsel %vm1300_vm9, %v3675_v12, %v3700_v2  ;;  %1734 = vmatpush1.bf16.msra.mxu1 %v3939_v32 }
 0x31f   : > { %v3940_v10 = vpack.c.bf16 %v1369_v27, %v1368_v30  ;;  %v3941_v47 = vpack.c.bf16 %v1371_v33, %v1370_v29  ;;  %v3751_v11 = vunpack.i.h.bf16 %v3749_v42  ;;  %v3750_v5 = vunpack.i.l.bf16 %v3749_v42 }
 0x320   : > { %1783 = vmatpush1.bf16.msra.mxu0 %v3901_v43  ;;  %v3726_v9 = vunpack.i.h.bf16 %v3724_v34  ;;  %v3725_v12 = vunpack.i.l.bf16 %v3724_v34  ;;  %v3942_v50 = vpack.c.bf16 %v1304_v36, %v1303_v40  ;;  %v3943_v3 = vpack.c.bf16 %v1306_v37, %v1305_v41 }
 0x321   : > { %1735 = vmatprep.subr.bf16.mxu1 %v3940_v10  ;;  %1784 = vmatprep.subr.bf16.mxu0 %v4096_v28  ;;  %v3740_v2 = vunpack.i.l.bf16 %v4499_v21  ;;  %v3771_v33 = vunpack.i.h.bf16 %v3769_v24  ;;  %v3770_v36 = vunpack.i.l.bf16 %v3769_v24 }
 0x322   : > { %v3729_v49 = vpop.permute.xlu1 %3728  ;;  %1736 = vmatpush1.bf16.msra.mxu1 %v3941_v47  ;;  %v1217_v13 = vsel %vm1214_vm14, %v3725_v12, %v3750_v5 }
 0x323   : > { %v3731_v51 = vunpack.i.h.bf16 %v3729_v49  ;;  %v3730_v52 = vunpack.i.l.bf16 %v3729_v49  ;;  %1737 = vmatprep.subr.bf16.mxu1 %v3934_v54  ;;  %v1218_v54 = vsel %vm1214_vm14, %v3726_v9, %v3751_v11  ;;  %v1176_v32 = vsel %vm1171_vm15, %v3755_v16, %v3740_v2 }
 0x324   : > { %v3946_v30 = vpack.c.bf16 %v1218_v54, %v1217_v13 }
 0x325   : > { %v1216_v57 = vsel %vm1214_vm14, %v3751_v11, %v3731_v51  ;;  %v1215_v58 = vsel %vm1214_vm14, %v3750_v5, %v3730_v52  ;;  %v1219_v60 = vsel %vm1214_vm14, %v3730_v52, %v3725_v12  ;;  %v1220_v59 = vsel %vm1214_vm14, %v3731_v51, %v3726_v9 }
 0x326   : > { %v3442_v63 = vpack.c.bf16 %v1216_v57, %v1216_v57  ;;  %v3440_v45 = vpack.c.bf16 %v1215_v58, %v1215_v58  ;;  %v3744_v39 = vpop.permute.xlu1 %3743  ;;  %1738 = vmatpush1.bf16.msra.mxu1 %v3935_v55  ;;  %v3756_v55 = vunpack.i.h.bf16 %v3754_v62  ;;  %v3947_v21 = vpack.c.bf16 %v1220_v59, %v1219_v60 }
 0x327   : > { %v3746_v14 = vunpack.i.h.bf16 %v3744_v39  ;;  %v3745_v15 = vunpack.i.l.bf16 %v3744_v39  ;;  %1739 = vmatprep.subr.bf16.mxu1 %v3942_v50 }
 0x328   : > { %1244 = vst [vmem:[#allocation2 + $0x2c] sm:$0xf] %v3442_v63  ;;  %1242 = vst [vmem:[#allocation2 + $0x20] sm:$0xf] %v3440_v45  ;;  %v1177_v29 = vsel %vm1171_vm15, %v3756_v55, %v3741_v25  ;;  %v3908_v45 = vld [vmem:[%s4960_s6] ss:$8 sps:$4 sm:$0xff]  }
 0x329   : > { %v1259_v17 = vsel %vm1257_vm13, %v3746_v14, %v3681_v48  ;;  %v1261_v8 = vsel %vm1257_vm13, %v3706_v44, %v3746_v14  ;;  %v1258_v19 = vsel %vm1257_vm13, %v3745_v15, %v3680_v53  ;;  %v1260_v22 = vsel %vm1257_vm13, %v3705_v7, %v3745_v15  ;;  %v1573_v15 = vpop.permute.xlu0 %1572 }
 0x32a   : > { %v3446_v23 = vpack.c.bf16 %v1259_v17, %v1259_v17  ;;  %v3444_v38 = vpack.c.bf16 %v1258_v19, %v1258_v19  ;;  %v3759_v46 = vpop.permute.xlu1 %3758  ;;  %1740 = vmatpush1.bf16.msra.mxu1 %v3943_v3  ;;  %v3944_v31 = vpack.c.bf16 %v1261_v8, %v1260_v22  ;;  %v3949_v52 = vpack.c.bf16 %v1177_v29, %v1176_v32 }
 0x32b   : > { %v3761_v37 = vunpack.i.h.bf16 %v3759_v46  ;;  %v3760_v40 = vunpack.i.l.bf16 %v3759_v46 }
 0x32c   : > { %1287 = vst [vmem:[#allocation2 + $0x44] sm:$0xf] %v3446_v23  ;;  %1285 = vst [vmem:[#allocation2 + $0x38] sm:$0xf] %v3444_v38  ;;  %1741 = vmatprep.subr.bf16.mxu1 %v3944_v31 }
 0x32d   : > { %v1500_v9 = vsel %vm1496_vm3, %v3761_v37, %v3771_v33  ;;  %v1499_v12 = vsel %vm1496_vm3, %v3760_v40, %v3770_v36 }
 0x32e   : > { %v3764_v27 = vpop.permute.xlu1 %3763  ;;  %1742 = vmatpush1.bf16.msra.mxu1 %v3945_v1  ;;  %v3951_v63 = vpack.c.bf16 %v1500_v9, %v1499_v12  ;;  %v1821_v12 = vld [vmem:[%s4962_s8] sm:$0xff] }
 0x32f   : > { %v3766_v34 = vunpack.i.h.bf16 %v3764_v27  ;;  %v3765_v42 = vunpack.i.l.bf16 %v3764_v27  ;;  %1743 = vmatprep.subr.bf16.mxu1 %v3946_v30  ;;  %v3903_v59 = vld [vmem:[#allocation2 + $0x20] ss:$12 sps:$4 sm:$0xff]  }
 0x331   : > { %v1173_v41 = vsel %vm1171_vm15, %v3766_v34, %v3756_v55  ;;  %v1175_v43 = vsel %vm1171_vm15, %v3741_v25, %v3766_v34  ;;  %v1172_v44 = vsel %vm1171_vm15, %v3765_v42, %v3755_v16  ;;  %v1174_v10 = vsel %vm1171_vm15, %v3740_v2, %v3765_v42 }
 0x332   : > { %v3438_v47 = vpack.c.bf16 %v1173_v41, %v1173_v41  ;;  %v3436_v48 = vpack.c.bf16 %v1172_v44, %v1172_v44  ;;  %v3774_v7 = vpop.permute.xlu1 %3773  ;;  %1744 = vmatpush1.bf16.msra.mxu1 %v3947_v21  ;;  %v3948_v51 = vpack.c.bf16 %v1175_v43, %v1174_v10 }
 0x333   : > { %v3776_v11 = vunpack.i.h.bf16 %v3774_v7  ;;  %v3775_v5 = vunpack.i.l.bf16 %v3774_v7  ;;  %v3902_v49 = vld [vmem:[#allocation2 + $0x38] ss:$12 sps:$4 sm:$0xff]  }
 0x334   : > { %1201 = vst [vmem:[#allocation2 + $0x14] sm:$0xf] %v3438_v47  ;;  %1199 = vst [vmem:[#allocation2 + $0x8] sm:$0xf] %v3436_v48  ;;  %1785 = vmatpush1.bf16.msra.mxu0 %v3902_v49  ;;  %1745 = vmatprep.subr.bf16.mxu1 %v3948_v51  ;;  %v1823_v51 = vld [vmem:[%s4963_s9] sm:$0xff] }
 0x335   : > { %v1498_v53 = vsel %vm1496_vm3, %v3771_v33, %v3776_v11  ;;  %v1497_v56 = vsel %vm1496_vm3, %v3770_v36, %v3775_v5  ;;  %v1501_v62 = vsel %vm1496_vm3, %v3775_v5, %v3760_v40  ;;  %v1502_v57 = vsel %vm1496_vm3, %v3776_v11, %v3761_v37  ;;  %1786 = vmatprep.subr.bf16.mxu0 %v4096_v28  ;;  %v3925_v33 = vld [vmem:[#allocation6] sm:$0xff] }
 0x336   : > { %v3468_v58 = vpack.c.bf16 %v1501_v62, %v1501_v62  ;;  %v3470_v60 = vpack.c.bf16 %v1502_v57, %v1502_v57  ;;  %1746 = vmatpush1.bf16.msra.mxu1 %v3949_v52  ;;  %v3950_v61 = vpack.c.bf16 %v1498_v53, %v1497_v56  ;;  %v1824_v52 = vld [vmem:[%s4963_s9 + $0x8] sm:$0xff]  ;;  %v3926_v62 = vld [vmem:[%s4957_s3] sm:$0xff] }
 0x338   : > { %1524 = vst [vmem:[#allocation2 + $0xc8] sm:$0xf] %v3468_v58  ;;  %1526 = vst [vmem:[#allocation2 + $0xd4] sm:$0xf] %v3470_v60  ;;  %1787 = vmatpush1.bf16.msra.mxu0 %v3903_v59  ;;  %1761 = vmatprep.subr.bf16.mxu1 %v3950_v61  ;;  %v3927_v59 = vld [vmem:[%s4957_s3 + $0x8] sm:$0xff] }
 0x339   : > { %1788 = vmatprep.subr.bf16.mxu0 %v4096_v28 }
 0x33a   : > { %1762 = vmatpush2.bf16.msra.mxu1 %v3951_v63 }
 0x33b   : > { %v3904_v39 = vld [vmem:[#allocation2 + $0x8] ss:$12 sps:$4 sm:$0xff]  }
 0x33c   : > { %1789 = vmatpush1.bf16.msra.mxu0 %v3904_v39 }
 0x33d   : > { %1804 = vmatprep.subr.bf16.mxu0 %v4096_v28  ;;  %1764 = vmatmul.mubr.bf16.vlgmr.msra.gmra.mxu1 %v3908_v45 }
 0x33e   : > { %1889 = vmatprep.mubr.f32.mxu1 %v4094_v0 }
 0x33f   : > { %v3905_v50 = vld [vmem:[#allocation2 + $0xc8] ss:$12 sps:$4 sm:$0xff]   ;;  %v1568_v3 = vpop.permute.xlu1 %1567 }
 0x340   : > { %1805 = vmatpush2.bf16.msra.mxu0 %v3905_v50 }
 0x341   : > { %3555 = vmatprep.subr.mxu0 %v4094_v0 }
 0x343   : > { %1807 = vmatmul.mubr.bf16.vlgmr.msra.gmra.mxu0 %v3908_v45 }
 0x344   : > { %3559 = vmatprep.mubr.msk.f32.mxu0 %vm4095_vm0, %v4094_v0 }
 0x3fd   : > { %v1765_v54 = vpop.f32.mrf.mxu1 }
 0x3fe   : > { %v1766_v38 = vadd.f32 %v1765_v54, %v1568_v3 }
 0x3ff   : > { %v1767_v13 = vpop.f32.mrf.mxu1 }
 0x400   : > { %v1768_v22 = vadd.f32 %v1767_v13, %v1568_v3  ;;  %v4621_v32 = vmul.f32 %v1766_v38, %v4373_v18 }
 0x401   : > { %v1769_v14 = vpop.f32.mrf.mxu1 }
 0x402   : > { %v1770_v17 = vadd.f32 %v1769_v14, %v1573_v15  ;;  %v4617_v1 = vmul.f32 %v1768_v22, %v4375_v20  ;;  %v1966_v40 = vmul.f32 %v4621_v32, %v4621_v32 }
 0x403   : > { %v1808_v16 = vpop.f32.mrf.mxu0  ;;  %v1771_v8 = vpop.f32.mrf.mxu1 }
 0x404   : > { %v1772_v23 = vadd.f32 %v1771_v8, %v1573_v15  ;;  %v1809_v2 = vadd.f32 %v1808_v16, %v1568_v3  ;;  %v4614_v31 = vmul.f32 %v1770_v17, %v4373_v18  ;;  %v1967_v36 = vmul.f32 %v4617_v1, %v4617_v1 }
 0x405   : > { %v1810_v19 = vpop.f32.mrf.mxu0 }
 0x406   : > { %v4611_v55 = vmul.f32 %v1772_v23, %v4375_v20  ;;  %v4629_v30 = vmul.f32 %v1809_v2, %v4370_v4  ;;  %v1969_v42 = vmul.f32 %v4614_v31, %v4614_v31 }
 0x407   : > { %v1811_v46 = vpop.f32.mrf.mxu0 }
 0x408   : > { %v1812_v24 = vadd.f32 %v1811_v46, %v1573_v15  ;;  %1853 = vmatprep.subr.mxu1 %v4611_v55  ;;  %v1970_v29 = vmul.f32 %v4611_v55, %v4611_v55  ;;  %v1968_v37 = vmul.f32 %v4629_v30, %v4629_v30 }
 0x409   : > { %v1813_v25 = vpop.f32.mrf.mxu0  ;;  %1854 = vmatpush1.msra.mxu1 %v4614_v31 }
 0x40a   : > { %v4624_v27 = vmul.f32 %v1812_v24, %v4370_v4  ;;  %1855 = vmatprep.subr.mxu1 %v4617_v1 }
 0x40b   : > { %1856 = vmatpush1.msra.mxu1 %v4621_v32 }
 0x40c   : > { %3556 = vmatpush3.msra.mxu0 %v4624_v27  ;;  %3353 = vmatmul.mubr.msk.f32.vlgmr.msra.gmra.mxu1 %vm453_vm1, %v3925_v33  ;;  %v1971_v34 = vmul.f32 %v4624_v27, %v4624_v27 }
 0x40d   : > { %3557 = vmatprep.subr.mxu0 %v4094_v0  ;;  %2000 = vmatprep.subr.mxu1 %v1970_v29 }
 0x40e   : > { %3558 = vmatpush3.msra.mxu0 %v4629_v30  ;;  %2001 = vmatpush1.msra.mxu1 %v1969_v42 }
 0x40f   : > { %3562 = vmatprep.subr.mxu0 %v4094_v0  ;;  %3560 = vmatmul.mubr.msk.f32.vlgmr.msra.gmra.mxu0 %vm453_vm1, %v3925_v33 }
 0x410   : > { %3563 = vmatpush3.msra.mxu0 %v1971_v34  ;;  %2002 = vmatprep.subr.mxu1 %v1967_v36 }
 0x411   : > { %3564 = vmatprep.subr.mxu0 %v4094_v0  ;;  %2003 = vmatpush1.msra.mxu1 %v1966_v40 }
 0x412   : > { %3565 = vmatpush3.msra.mxu0 %v1968_v37  ;;  %2036 = vmatprep.mubr.f32.mxu1 %v4094_v0 }
 0x413   : > { %3566 = vmatprep.mubr.msk.f32.mxu0 %vm4095_vm0, %v4094_v0  ;;  %3355 = vmatmul.mubr.msk.f32.vlgmr.msra.gmra.mxu1 %vm453_vm1, %v3925_v33 }
 0x414   : > { %3567 = vmatmul.mubr.msk.f32.vlgmr.msra.gmra.mxu0 %vm453_vm1, %v3925_v33  ;;  %2191 = vmatprep.mubr.f32.mxu1 %v4094_v0 }
 0x415   : > { %3571 = vmatprep.mubr.msk.f32.mxu0 %vm760_vm2, %v4323_v26  ;;  %v1822_v26 = vld [vmem:[%s4962_s8 + $0x8] sm:$0xff] }
 0x4cc   : > { %v1891_v21 = vpop.f32.mrf.mxu1 }
 0x4ce   : > { %v1893_v41 = vpop.f32.mrf.mxu1 }
 0x4cf   : > { %v1962_v43 = vpop.f32.mrf.mxu0  ;;  %v2113_v44 = vadd.f32 %v1893_v41, %v1891_v21 }
 0x4d1   : > { %v3561_v10 = vpop.f32.mrf.mxu0  ;;  %v2114_v47 = vadd.f32 %v2113_v44, %v1962_v43 }
 0x4d3   : > { %v2038_v48 = vpop.f32.mrf.mxu1  ;;  %2115 = vadd.xlane.f32.xlu0 %v2114_v47 }
 0x4d4   : > { %v2109_v7 = vpop.f32.mrf.mxu0 }
 0x4d5   : > { %v2040_v11 = vpop.f32.mrf.mxu1 }
 0x4d6   : > { %v3568_v5 = vpop.f32.mrf.mxu0  ;;  %v2117_v49 = vadd.f32 %v2040_v11, %v2038_v48 }
 0x4d8   : > { %v2118_v9 = vadd.f32 %v2117_v49, %v2109_v7 }
 0x4da   : > { %2119 = vadd.xlane.f32.xlu1 %v2118_v9 }
 0x4e9   : > { %2439 = vperm.xlu0 %3656, %v1821_v12  }
 0x4eb   : > { %2444 = vperm.xlu1 %3655, %v1822_v26  }
 0x4ed   : > { %2461 = vperm.xlu0 %3656, %v1823_v51  }
 0x4ef   : > { %2466 = vperm.xlu1 %3655, %v1824_v52  }
 0x55c   : > { %v2116_v53 = vpop.xlane.xlu0 %2115 }
 0x55d   : > { %v2121_v56 = vmul.f32 0.001953125, %v2116_v53 }
 0x55f   : > { %2157 = vmatprep.subr.mxu1 %v2121_v56  ;;  %3569 = vmatprep.subr.mxu0 %v2121_v56  ;;  %v2123_v58 = vmul.f32 %v2121_v56, %v2121_v56 }
 0x560   : > { %2158 = vmatpush1.msra.mxu1 %v2121_v56  ;;  %3570 = vmatpush3.msra.mxu0 %v2121_v56 }
 0x561   : > { %3357 = vmatmul.mubr.msk.f32.vlgmr.msra.gmra.mxu1 %vm760_vm2, %v3926_v62  ;;  %3572 = vmatmul.mubr.msk.f32.vlgmr.msra.gmra.mxu0 %vm760_vm2, %v4344_v35 }
 0x562   : > { %2197 = vmatprep.mubr.f32.mxu1 %v4094_v0  ;;  %2343 = vmatprep.mubr.f32.mxu0 %v4094_v0 }
 0x563   : > { %v2120_v57 = vpop.xlane.xlu1 %2119 }
 0x564   : > { %v2122_v60 = vmul.f32 0.001953125, %v2120_v57  ;;  %v2440_v13 = vpop.permute.xlu0 %2439 }
 0x565   : > { %3358 = vmatmul.mubr.msk.f32.gmra.mxu1 %vm760_vm2, %v3927_v59 }
 0x566   : > { %v2124_v61 = vsub.f32 %v2122_v60, %v2123_v58  ;;  %3576 = vmatprep.mubr.msk.f32.mxu1 %vm760_vm2, %v3926_v62 }
 0x567   : > { %v2445_v14 = vpop.permute.xlu1 %2444 }
 0x568   : > { %v2125_v63 = vadd.f32 1e-05, %v2124_v61  ;;  %v2462_v24 = vpop.permute.xlu0 %2461 }
 0x56a   : > { %3923 = vrsqrt.f32 %v2125_v63 }
 0x56b   : > { %v2467_v42 = vpop.permute.xlu1 %2466 }
 0x577   : > { %v3924_v45 = vpop.eup %3923 }
 0x578   : > { %2309 = vmatprep.subr.mxu0 %v3924_v45  ;;  %3574 = vmatprep.subr.mxu1 %v3924_v45 }
 0x579   : > { %2310 = vmatpush1.msra.mxu0 %v3924_v45  ;;  %3575 = vmatpush3.msra.mxu1 %v3924_v45 }
 0x57a   : > { %3361 = vmatmul.mubr.msk.f32.vlgmr.msra.gmra.mxu0 %vm760_vm2, %v3926_v62  ;;  %3577 = vmatmul.mubr.msk.f32.vlgmr.msra.gmra.mxu1 %vm760_vm2, %v3927_v59 }
 0x57b   : > { %2349 = vmatprep.mubr.f32.mxu0 %v4094_v0  ;;  %3108 = vmatprep.subr.bf16.mxu1 %v4096_v28 }
 0x57e   : > { %3362 = vmatmul.mubr.msk.f32.gmra.mxu0 %vm760_vm2, %v3927_v59 }
 0x621   : > { %v2193_v35 = vpop.f32.mrf.mxu1  ;;  %v3573_v50 = vpop.f32.mrf.mxu0 }
 0x622   : > { %v2431_v8 = vsub.f32 %v4621_v32, %v2193_v35  ;;  %v2436_v19 = vsub.f32 %v4624_v27, %v3573_v50 }
 0x623   : > { %v2195_v39 = vpop.f32.mrf.mxu1  ;;  %v2270_v15 = vpop.f32.mrf.mxu0 }
 0x624   : > { %v2432_v23 = vsub.f32 %v4617_v1, %v2195_v39  ;;  %v2433_v38 = vsub.f32 %v4629_v30, %v2270_v15  ;;  %v2500_v15 = vld [vmem:[%s4965_s11 + $0x8] sm:$0xff] }
 0x625   : > { %v2199_v54 = vpop.f32.mrf.mxu1 }
 0x626   : > { %v2434_v27 = vsub.f32 %v4614_v31, %v2199_v54 }
 0x627   : > { %v2201_v16 = vpop.f32.mrf.mxu1 }
 0x628   : > { %v2435_v7 = vsub.f32 %v4611_v55, %v2201_v16  ;;  %v2499_v16 = vld [vmem:[%s4965_s11] sm:$0xff] }
 0x63a   : > { %v2345_v3 = vpop.f32.mrf.mxu0  ;;  %v3578_v17 = vpop.f32.mrf.mxu1 }
 0x63b   : > { %v2447_v22 = vmul.f32 %v2440_v13, %v2345_v3  ;;  %v2452_v0 = vmul.f32 %v3578_v17, %v2445_v14  ;;  %v3918_v3 = vld [vmem:[%s4964_s10 + $0x4] ss:$8 sps:$4 sm:$0xff]  }
 0x63c   : > { %v2347_v46 = vpop.f32.mrf.mxu0  ;;  %v2422_v2 = vpop.f32.mrf.mxu1  ;;  %3431 = vmatprep.mubr.msk.bf16.mxu1 %vm453_vm1, %v3918_v3  ;;  %3430 = vmatprep.mubr.msk.bf16.mxu0 %vm453_vm1, %v3918_v3 }
 0x63d   : > { %v2453_v25 = vmul.f32 %v2447_v22, %v2431_v8  ;;  %v2458_v29 = vmul.f32 %v2452_v0, %v2436_v19  ;;  %v2448_v33 = vmul.f32 %v2440_v13, %v2347_v46  ;;  %v2449_v34 = vmul.f32 %v2440_v13, %v2422_v2 }
 0x63e   : > { %v2351_v36 = vpop.f32.mrf.mxu0 }
 0x63f   : > { %v2469_v37 = vadd.f32 %v2462_v24, %v2453_v25  ;;  %v2474_v40 = vadd.f32 %v2467_v42, %v2458_v29  ;;  %v2454_v32 = vmul.f32 %v2448_v33, %v2432_v23  ;;  %v2455_v21 = vmul.f32 %v2449_v34, %v2433_v38 }
 0x640   : > { %v2450_v41 = vmul.f32 %v2445_v14, %v2351_v36  ;;  %v2353_v43 = vpop.f32.mrf.mxu0 }
 0x641   : > { %vm2475_vm0 = vcmp.gt.f32.partialorder %v2469_v37, 0.0  ;;  %v2481_v1 = vmul.f32 0.01, %v2469_v37  ;;  %vm2480_vm2 = vcmp.gt.f32.partialorder %v2474_v40, 0.0  ;;  %v2486_v30 = vmul.f32 0.01, %v2474_v40 }
 0x642   : > { %v2470_v44 = vadd.f32 %v2462_v24, %v2454_v32  ;;  %v2471_v10 = vadd.f32 %v2462_v24, %v2455_v21  ;;  %v2456_v47 = vmul.f32 %v2450_v41, %v2434_v27  ;;  %v2451_v48 = vmul.f32 %v2445_v14, %v2353_v43 }
 0x643   : > { %v2487_v11 = vsel %vm2475_vm0, %v2469_v37, %v2481_v1  ;;  %v2492_v5 = vsel %vm2480_vm2, %v2474_v40, %v2486_v30 }
 0x644   : > { %v2498_v49 = vmul.f32 %v2492_v5, %v4370_v4  ;;  %vm2476_vm4 = vcmp.gt.f32.partialorder %v2470_v44, 0.0  ;;  %v2482_v9 = vmul.f32 0.01, %v2470_v44  ;;  %vm2477_vm5 = vcmp.gt.f32.partialorder %v2471_v10, 0.0 }
 0x645   : > { %v2483_v31 = vmul.f32 0.01, %v2471_v10  ;;  %v2472_v12 = vadd.f32 %v2467_v42, %v2456_v47  ;;  %v2457_v26 = vmul.f32 %v2451_v48, %v2435_v7  ;;  %v4697_v51 = vmul.f32 %v2487_v11, %v4373_v18 }
 0x646   : > { %v2488_v52 = vsel %vm2476_vm4, %v2470_v44, %v2482_v9  ;;  %v3490_v53 = vpack.c.bf16 %v2498_v49, %v2498_v49 }
 0x647   : > { %v4700_v56 = vmul.f32 %v2488_v52, %v4375_v20  ;;  %v2489_v62 = vsel %vm2477_vm5, %v2471_v10, %v2483_v31  ;;  %vm2478_vm6 = vcmp.gt.f32.partialorder %v2472_v12, 0.0  ;;  %v2484_v55 = vmul.f32 0.01, %v2472_v12 }
 0x648   : > { %v2495_v57 = vmul.f32 %v2489_v62, %v4370_v4  ;;  %v2473_v58 = vadd.f32 %v2467_v42, %v2457_v26  ;;  %2692 = vst [vmem:[#allocation2 + $0x74] sm:$0xf] %v3490_v53 }
 0x649   : > { %v2490_v60 = vsel %vm2478_vm6, %v2472_v12, %v2484_v55 }
 0x64a   : > { %v4704_v59 = vmul.f32 %v2490_v60, %v4373_v18  ;;  %vm2479_vm7 = vcmp.gt.f32.partialorder %v2473_v58, 0.0  ;;  %v2485_v61 = vmul.f32 0.01, %v2473_v58  ;;  %v3782_v63 = vpack.i.bf16 %v2498_v49, %v2495_v57 }
 0x64b   : > { %v3488_v50 = vpack.c.bf16 %v2495_v57, %v2495_v57 }
 0x64c   : > { %v2491_v45 = vsel %vm2479_vm7, %v2473_v58, %v2485_v61  ;;  %3783 = vrot.lane.b32.xlu1 %v3782_v63, %s5001_s26  ;;  %3778 = vrot.lane.b32.xlu0 %v3782_v63, %s5002_s28  ;;  %v3797_v39 = vpack.i.bf16 %v4704_v59, %v4697_v51  ;;  %v3952_v54 = vpack.c.bf16 %v4704_v59, %v4697_v51 }
 0x64d   : > { %v4708_v35 = vmul.f32 %v2491_v45, %v4375_v20  ;;  %2690 = vst [vmem:[#allocation2 + $0x68] sm:$0xf] %v3488_v50 }
 0x64f   : > { %v3953_v13 = vpack.c.bf16 %v4708_v35, %v4700_v56  ;;  %v3812_v14 = vpack.i.bf16 %v4708_v35, %v4700_v56 }
 0x650   : > { %3798 = vrot.lane.b32.xlu1 %v3797_v39, %s5001_s26  ;;  %3788 = vrot.lane.b32.xlu0 %v3782_v63, %s5003_s17 }
 0x654   : > { %3808 = vrot.lane.b32.xlu1 %v3797_v39, %s5004_s16  ;;  %3793 = vrot.lane.b32.xlu0 %v3797_v39, %s5002_s28 }
 0x658   : > { %3813 = vrot.lane.b32.xlu1 %v3812_v14, %s5002_s28  ;;  %3803 = vrot.lane.b32.xlu0 %v3797_v39, %s5003_s17 }
 0x65c   : > { %3818 = vrot.lane.b32.xlu1 %v3782_v63, %s5004_s16  ;;  %3823 = vrot.lane.b32.xlu0 %v3812_v14, %s5001_s26  ;;  %s3581_s26 = smul.u32 768, %s4194_s25 }
 0x660   : > { %3838 = vrot.lane.b32.xlu1 %v3812_v14, %s5003_s17  ;;  %3828 = vrot.lane.b32.xlu0 %v3797_v39, %s4999_s18  ;;  %s4910_s17 = scalar_lea.hbm %s4966_s12, %s3581_s26 }
 0x664   : > { %3843 = vrot.lane.b32.xlu1 %v3797_v39, %s5005_s0  ;;  %3833 = vrot.lane.b32.xlu0 %v3782_v63, %s4999_s18 }
 0x668   : > { %3848 = vrot.lane.b32.xlu1 %v3782_v63, %s5005_s0  ;;  %3853 = vrot.lane.b32.xlu0 %v3812_v14, %s5004_s16 }
 0x66c   : > { %3863 = vrot.lane.b32.xlu1 %v3812_v14, %s4999_s18  ;;  %3858 = vrot.lane.b32.xlu0 %v3797_v39, %s5000_s1 }
 0x670   : > { %3878 = vrot.lane.b32.xlu1 %v3797_v39, %s5006_s15  ;;  %3868 = vrot.lane.b32.xlu0 %v3812_v14, %s5005_s0  ;;  %s430_s0 = sand.u32 1, %s4082_s22  }
 0x671   : > { %s4914_s25 = scalar_lea.sflag [#allocation5], %s430_s0 }
 0x674   : > { %3883 = vrot.lane.b32.xlu1 %v3812_v14, %s5000_s1  ;;  %3873 = vrot.lane.b32.xlu0 %v3782_v63, %s5000_s1  ;;  %s4105_s1 = smov [#allocation8]  }
 0x675   : > { %s4026_s16 = sshll.u32 %s4105_s1, 4  ;;  %s4027_s16 = int_to_ptr.vmem [resolvable:$false] %s4026_s16 }
 0x678   : > { %3893 = vrot.lane.b32.xlu1 %v3782_v63, %s5006_s15  ;;  %3888 = vrot.lane.b32.xlu0 %v3812_v14, %s5006_s15  ;;  %s3579_s15 = smul.u32 48, %s430_s0 }
 0x67a   : > { %s432_s19 = scalar_lea.vmem [#allocation8], %s3579_s15  ;;  %s4028_s15 = scalar_lea.vmem %s4027_s16, 1536 }
 0x67b   : > { %s3181_s20 = sshll.u32 %s432_s19, 4  ;;  %s4904_s20 = int_to_ptr.vmem [resolvable:$true] %s3181_s20 }
 0x67c   : > { %2906 = vperm.xlu1 %3655, %v2500_v15   ;;  %2901 = vperm.xlu0 %3656, %v2499_v16   ;;  %p4029_p8 = scmp.lt.s32.totalorder %s4904_s20, %s4027_s16 }
 0x6be   : > { %v3784_v17 = vpop.permute.xlu1 %3783  ;;  %v3779_v8 = vpop.permute.xlu0 %3778 }
 0x6bf   : > { %v3786_v22 = vunpack.i.h.bf16 %v3784_v17  ;;  %v3785_v0 = vunpack.i.l.bf16 %v3784_v17  ;;  %v3781_v42 = vunpack.i.h.bf16 %v3779_v8  ;;  %v3780_v36 = vunpack.i.l.bf16 %v3779_v8 }
 0x6c2   : > { %v3799_v19 = vpop.permute.xlu1 %3798  ;;  %v3789_v23 = vpop.permute.xlu0 %3788 }
 0x6c3   : > { %v3801_v38 = vunpack.i.h.bf16 %v3799_v19  ;;  %v3800_v46 = vunpack.i.l.bf16 %v3799_v19  ;;  %v3791_v10 = vunpack.i.h.bf16 %v3789_v23  ;;  %v3790_v47 = vunpack.i.l.bf16 %v3789_v23 }
 0x6c5   : > { %v2752_v2 = vsel %vm1410_vm11, %v3786_v22, %v3801_v38  ;;  %v2751_v24 = vsel %vm1410_vm11, %v3785_v0, %v3800_v46 }
 0x6c6   : > { %v3498_v25 = vpack.c.bf16 %v2752_v2, %v2752_v2  ;;  %v3496_v29 = vpack.c.bf16 %v2751_v24, %v2751_v24  ;;  %v4756_v33 = vpop.permute.xlu1 %3808  ;;  %v3794_v34 = vpop.permute.xlu0 %3793 }
 0x6c7   : > { %v3796_v37 = vunpack.i.h.bf16 %v3794_v34  ;;  %v3795_v40 = vunpack.i.l.bf16 %v3794_v34  ;;  %v3811_v34 = vunpack.i.h.bf16 %v4756_v33 }
 0x6c8   : > { %2776 = vst [vmem:[#allocation2 + $0xa4] sm:$0xf] %v3498_v25  ;;  %2774 = vst [vmem:[#allocation2 + $0x98] sm:$0xf] %v3496_v29 }
 0x6c9   : > { %v2794_v32 = vsel %vm1453_vm10, %v3781_v42, %v3796_v37  ;;  %v2793_v21 = vsel %vm1453_vm10, %v3780_v36, %v3795_v40 }
 0x6ca   : > { %v3814_v27 = vpop.permute.xlu1 %3813  ;;  %v3502_v41 = vpack.c.bf16 %v2794_v32, %v2794_v32  ;;  %v3500_v43 = vpack.c.bf16 %v2793_v21, %v2793_v21  ;;  %v3804_v44 = vpop.permute.xlu0 %3803 }
 0x6cb   : > { %v3816_v1 = vunpack.i.h.bf16 %v3814_v27  ;;  %v3815_v30 = vunpack.i.l.bf16 %v3814_v27  ;;  %v3806_v48 = vunpack.i.h.bf16 %v3804_v44  ;;  %v3805_v7 = vunpack.i.l.bf16 %v3804_v44 }
 0x6cc   : > { %2818 = vst [vmem:[#allocation2 + $0xbc] sm:$0xf] %v3502_v41  ;;  %2816 = vst [vmem:[#allocation2 + $0xb0] sm:$0xf] %v3500_v43 }
 0x6cd   : > { %v2790_v11 = vsel %vm1453_vm10, %v3816_v1, %v3781_v42  ;;  %v2789_v5 = vsel %vm1453_vm10, %v3815_v30, %v3780_v36  ;;  %v2791_v49 = vsel %vm1453_vm10, %v3795_v40, %v3815_v30  ;;  %v2792_v9 = vsel %vm1453_vm10, %v3796_v37, %v3816_v1 }
 0x6ce   : > { %v2710_v31 = vsel %vm1367_vm12, %v3791_v10, %v3806_v48  ;;  %v2709_v12 = vsel %vm1367_vm12, %v3790_v47, %v3805_v7  ;;  %v3819_v26 = vpop.permute.xlu1 %3818  ;;  %v3824_v62 = vpop.permute.xlu0 %3823  ;;  %v3954_v58 = vpack.c.bf16 %v2792_v9, %v2791_v49  ;;  %v3955_v60 = vpack.c.bf16 %v2790_v11, %v2789_v5 }
 0x6cf   : > { %v3494_v52 = vpack.c.bf16 %v2710_v31, %v2710_v31  ;;  %v3492_v53 = vpack.c.bf16 %v2709_v12, %v2709_v12  ;;  %v3826_v55 = vunpack.i.h.bf16 %v3824_v62  ;;  %v3825_v57 = vunpack.i.l.bf16 %v3824_v62  ;;  %v3910_v25 = vld [vmem:[#allocation2 + $0x98] ss:$12 sps:$4 sm:$0xff]  }
 0x6d0   : > { %3065 = vmatprep.subr.bf16.mxu0 %v3955_v60  ;;  %v3820_v2 = vunpack.i.l.bf16 %v3819_v26  ;;  %v3810_v42 = vunpack.i.l.bf16 %v4756_v33 }
 0x6d1   : > { %2734 = vst [vmem:[#allocation2 + $0x8c] sm:$0xf] %v3494_v52  ;;  %2732 = vst [vmem:[#allocation2 + $0x80] sm:$0xf] %v3492_v53  ;;  %v2748_v61 = vsel %vm1410_vm11, %v3826_v55, %v3786_v22  ;;  %v2750_v63 = vsel %vm1410_vm11, %v3801_v38, %v3826_v55  ;;  %v2747_v45 = vsel %vm1410_vm11, %v3825_v57, %v3785_v0  ;;  %3066 = vmatpush1.bf16.msra.mxu0 %v3954_v58  ;;  %v3912_v55 = vld [vmem:[#allocation2 + $0x68] ss:$12 sps:$4 sm:$0xff]  }
 0x6d2   : > { %v2749_v39 = vsel %vm1410_vm11, %v3800_v46, %v3825_v57  ;;  %v3839_v50 = vpop.permute.xlu1 %3838  ;;  %v4782_v16 = vpop.permute.xlu0 %3828  ;;  %v3957_v38 = vpack.c.bf16 %v2748_v61, %v2747_v45  ;;  %v3821_v46 = vunpack.i.h.bf16 %v3819_v26  ;;  %v2643_v40 = vsel %vm1300_vm9, %v3820_v2, %v3810_v42 }
 0x6d3   : > { %v3841_v14 = vunpack.i.h.bf16 %v3839_v50  ;;  %v3840_v15 = vunpack.i.l.bf16 %v3839_v50  ;;  %v3909_v3 = vld [vmem:[#allocation2 + $0xb0] ss:$12 sps:$4 sm:$0xff]   ;;  %v3956_v23 = vpack.c.bf16 %v2750_v63, %v2749_v39  ;;  %v3831_v27 = vunpack.i.h.bf16 %v4782_v16 }
 0x6d4   : > { %3109 = vmatpush1.bf16.msra.mxu1 %v3909_v3  ;;  %3067 = vmatprep.subr.bf16.mxu0 %v3957_v38  ;;  %v2644_v32 = vsel %vm1300_vm9, %v3821_v46, %v3811_v34  ;;  %v3830_v41 = vunpack.i.l.bf16 %v4782_v16 }
 0x6d5   : > { %v2706_v17 = vsel %vm1367_vm12, %v3841_v14, %v3791_v10  ;;  %v2705_v8 = vsel %vm1367_vm12, %v3840_v15, %v3790_v47  ;;  %v2707_v19 = vsel %vm1367_vm12, %v3805_v7, %v3840_v15  ;;  %v2708_v22 = vsel %vm1367_vm12, %v3806_v48, %v3841_v14  ;;  %3110 = vmatprep.subr.bf16.mxu1 %v4096_v28 }
 0x6d6   : > { %v4792_v0 = vpop.permute.xlu1 %3843  ;;  %v3834_v24 = vpop.permute.xlu0 %3833  ;;  %v3958_v29 = vpack.c.bf16 %v2706_v17, %v2705_v8  ;;  %3068 = vmatpush1.bf16.msra.mxu0 %v3956_v23  ;;  %v3959_v36 = vpack.c.bf16 %v2708_v22, %v2707_v19  ;;  %v3960_v60 = vpack.c.bf16 %v2644_v32, %v2643_v40 }
 0x6d7   : > { %v3846_v30 = vunpack.i.h.bf16 %v4792_v0  ;;  %v3845_v44 = vunpack.i.l.bf16 %v4792_v0  ;;  %v3836_v10 = vunpack.i.h.bf16 %v3834_v24  ;;  %v3835_v47 = vunpack.i.l.bf16 %v3834_v24 }
 0x6d8   : > { %3111 = vmatpush1.bf16.msra.mxu1 %v3910_v25  ;;  %3069 = vmatprep.subr.bf16.mxu0 %v3958_v29  ;;  %v3911_v1 = vld [vmem:[#allocation2 + $0x80] ss:$12 sps:$4 sm:$0xff]  }
 0x6d9   : > { %3112 = vmatprep.subr.bf16.mxu1 %v4096_v28  ;;  %v2601_v57 = vsel %vm1257_vm13, %v3835_v47, %v3830_v41  ;;  %v2602_v58 = vsel %vm1257_vm13, %v3836_v10, %v3831_v27 }
 0x6da   : > { %v4797_v37 = vpop.permute.xlu1 %3848  ;;  %v3854_v21 = vpop.permute.xlu0 %3853  ;;  %3070 = vmatpush1.bf16.msra.mxu0 %v3959_v36  ;;  %v3962_v17 = vpack.c.bf16 %v2602_v58, %v2601_v57 }
 0x6db   : > { %v3856_v33 = vunpack.i.h.bf16 %v3854_v21  ;;  %v3855_v43 = vunpack.i.l.bf16 %v3854_v21  ;;  %v3851_v26 = vunpack.i.h.bf16 %v4797_v37  ;;  %v3850_v52 = vunpack.i.l.bf16 %v4797_v37  ;;  %3071 = vmatprep.subr.bf16.mxu0 %v3953_v13 }
 0x6dc   : > { %3113 = vmatpush1.bf16.msra.mxu1 %v3911_v1 }
 0x6dd   : > { %v2640_v48 = vsel %vm1300_vm9, %v3856_v33, %v3821_v46  ;;  %v2642_v7 = vsel %vm1300_vm9, %v3811_v34, %v3856_v33  ;;  %v2639_v11 = vsel %vm1300_vm9, %v3855_v43, %v3820_v2  ;;  %v2641_v5 = vsel %vm1300_vm9, %v3810_v42, %v3855_v43  ;;  %3114 = vmatprep.subr.bf16.mxu1 %v4096_v28 }
 0x6de   : > { %v3864_v49 = vpop.permute.xlu1 %3863  ;;  %v3486_v9 = vpack.c.bf16 %v2640_v48, %v2640_v48  ;;  %v3484_v31 = vpack.c.bf16 %v2639_v11, %v2639_v11  ;;  %v4816_v12 = vpop.permute.xlu0 %3858  ;;  %3072 = vmatpush1.bf16.msra.mxu0 %v3952_v54  ;;  %v3961_v61 = vpack.c.bf16 %v2642_v7, %v2641_v5  ;;  %v2559_v54 = vsel %vm1214_vm14, %v3850_v52, %v3845_v44 }
 0x6df   : > { %v3866_v53 = vunpack.i.h.bf16 %v3864_v49  ;;  %v3865_v62 = vunpack.i.l.bf16 %v3864_v49  ;;  %v2560_v50 = vsel %vm1214_vm14, %v3851_v26, %v3846_v30  ;;  %v3861_v16 = vunpack.i.h.bf16 %v4816_v12 }
 0x6e0   : > { %2668 = vst [vmem:[#allocation2 + $0x5c] sm:$0xf] %v3486_v9  ;;  %2666 = vst [vmem:[#allocation2 + $0x50] sm:$0xf] %v3484_v31  ;;  %3115 = vmatpush1.bf16.msra.mxu1 %v3912_v55  ;;  %3073 = vmatprep.subr.bf16.mxu0 %v3961_v61  ;;  %v3860_v3 = vunpack.i.l.bf16 %v4816_v12  ;;  %v3964_v32 = vpack.c.bf16 %v2560_v50, %v2559_v54  ;;  %v3928_v50 = vld [vmem:[%s4271_s29] sm:$0xff] }
 0x6e1   : > { %v2597_v63 = vsel %vm1257_vm13, %v3865_v62, %v3835_v47  ;;  %v2598_v56 = vsel %vm1257_vm13, %v3866_v53, %v3836_v10  ;;  %v2599_v35 = vsel %vm1257_vm13, %v3830_v41, %v3865_v62  ;;  %v2600_v13 = vsel %vm1257_vm13, %v3831_v27, %v3866_v53  ;;  %3116 = vmatprep.subr.bf16.mxu1 %v4096_v28 }
 0x6e2   : > { %v4839_v45 = vpop.permute.xlu1 %3878  ;;  %v3480_v39 = vpack.c.bf16 %v2597_v63, %v2597_v63  ;;  %v3482_v51 = vpack.c.bf16 %v2598_v56, %v2598_v56  ;;  %v3869_v59 = vpop.permute.xlu0 %3868  ;;  %3074 = vmatpush1.bf16.msra.mxu0 %v3960_v60  ;;  %v3963_v8 = vpack.c.bf16 %v2600_v13, %v2599_v35 }
 0x6e3   : > { %v3871_v14 = vunpack.i.h.bf16 %v3869_v59  ;;  %v3870_v15 = vunpack.i.l.bf16 %v3869_v59  ;;  %v3881_v37 = vunpack.i.h.bf16 %v4839_v45  ;;  %v3880_v40 = vunpack.i.l.bf16 %v4839_v45 }
 0x6e4   : > { %2624 = vst [vmem:[#allocation2 + $0x38] sm:$0xf] %v3480_v39  ;;  %2626 = vst [vmem:[#allocation2 + $0x44] sm:$0xf] %v3482_v51  ;;  %3075 = vmatprep.subr.bf16.mxu0 %v3963_v8  ;;  %v3929_v8 = vld [vmem:[%s4271_s29 + $0x8] sm:$0xff] }
 0x6e5   : > { %v2556_v19 = vsel %vm1214_vm14, %v3871_v14, %v3851_v26  ;;  %v2558_v22 = vsel %vm1214_vm14, %v3846_v30, %v3871_v14  ;;  %v2555_v0 = vsel %vm1214_vm14, %v3870_v15, %v3850_v52  ;;  %v2557_v23 = vsel %vm1214_vm14, %v3845_v44, %v3870_v15 }
 0x6e6   : > { %v3884_v38 = vpop.permute.xlu1 %3883  ;;  %v3478_v46 = vpack.c.bf16 %v2556_v19, %v2556_v19  ;;  %v3476_v2 = vpack.c.bf16 %v2555_v0, %v2555_v0  ;;  %v3874_v24 = vpop.permute.xlu0 %3873  ;;  %3076 = vmatpush1.bf16.msra.mxu0 %v3962_v17  ;;  %v3965_v21 = vpack.c.bf16 %v2558_v22, %v2557_v23 }
 0x6e7   : > { %v3886_v25 = vunpack.i.h.bf16 %v3884_v38  ;;  %v3885_v29 = vunpack.i.l.bf16 %v3884_v38  ;;  %v3876_v34 = vunpack.i.h.bf16 %v3874_v24  ;;  %v3875_v42 = vunpack.i.l.bf16 %v3874_v24  ;;  %v3913_v36 = vld [vmem:[#allocation2 + $0x50] ss:$12 sps:$4 sm:$0xff]  }
 0x6e8   : > { %2584 = vst [vmem:[#allocation2 + $0x2c] sm:$0xf] %v3478_v46  ;;  %2582 = vst [vmem:[#allocation2 + $0x20] sm:$0xf] %v3476_v2  ;;  %3117 = vmatpush1.bf16.msra.mxu1 %v3913_v36  ;;  %3077 = vmatprep.subr.bf16.mxu0 %v3965_v21  ;;  %v3930_v38 = vld [vmem:[%s4271_s29 + $0x10] sm:$0xff]  ;;  %v3931_v24 = vld [vmem:[%s4271_s29 + $0x18] sm:$0xff] }
 0x6e9   : > { %v2515_v27 = vsel %vm1171_vm15, %v3860_v3, %v3885_v29  ;;  %v2516_v41 = vsel %vm1171_vm15, %v3861_v16, %v3886_v25  ;;  %v2514_v33 = vsel %vm1171_vm15, %v3886_v25, %v3876_v34  ;;  %v2513_v43 = vsel %vm1171_vm15, %v3885_v29, %v3875_v42  ;;  %3118 = vmatprep.subr.bf16.mxu1 %v4096_v28 }
 0x6ea   : > { %v3894_v1 = vpop.permute.xlu1 %3893  ;;  %v3474_v30 = vpack.c.bf16 %v2514_v33, %v2514_v33  ;;  %v2517_v44 = vsel %vm1171_vm15, %v3875_v42, %v3860_v3  ;;  %v2518_v10 = vsel %vm1171_vm15, %v3876_v34, %v3861_v16  ;;  %v3472_v47 = vpack.c.bf16 %v2513_v43, %v2513_v43  ;;  %v3889_v48 = vpop.permute.xlu0 %3888  ;;  %3078 = vmatpush1.bf16.msra.mxu0 %v3964_v32 }
 0x6eb   : > { %v3896_v7 = vunpack.i.h.bf16 %v3894_v1  ;;  %v3895_v11 = vunpack.i.l.bf16 %v3894_v1  ;;  %v3914_v5 = vld [vmem:[#allocation2 + $0x38] ss:$12 sps:$4 sm:$0xff]   ;;  %v3891_v49 = vunpack.i.h.bf16 %v3889_v48  ;;  %v3890_v9 = vunpack.i.l.bf16 %v3889_v48 }
 0x6ec   : > { %2542 = vst [vmem:[#allocation2 + $0x14] sm:$0xf] %v3474_v30  ;;  %2540 = vst [vmem:[#allocation2 + $0x8] sm:$0xf] %v3472_v47  ;;  %3119 = vmatpush1.bf16.msra.mxu1 %v3914_v5  ;;  %v3966_v26 = vpack.c.bf16 %v2518_v10, %v2517_v44  ;;  %v3967_v52 = vpack.c.bf16 %v2516_v41, %v2515_v27  ;;  %v3933_v27 = vld [vmem:[%s4271_s29 + $0x28] sm:$0xff] }
 0x6ed   : > { %v2835_v31 = vsel %vm1496_vm3, %v3895_v11, %v3880_v40  ;;  %v2836_v12 = vsel %vm1496_vm3, %v3896_v7, %v3881_v37  ;;  %v2832_v55 = vsel %vm1496_vm3, %v3891_v49, %v3896_v7  ;;  %v2834_v57 = vsel %vm1496_vm3, %v3881_v37, %v3891_v49  ;;  %3120 = vmatprep.subr.bf16.mxu1 %v4096_v28 }
 0x6ee   : > { %v3504_v53 = vpack.c.bf16 %v2835_v31, %v2835_v31  ;;  %v3506_v62 = vpack.c.bf16 %v2836_v12, %v2836_v12  ;;  %v2831_v58 = vsel %vm1496_vm3, %v3890_v9, %v3895_v11  ;;  %v2833_v60 = vsel %vm1496_vm3, %v3880_v40, %v3890_v9  ;;  %3079 = vmatprep.subr.bf16.mxu0 %v3967_v52  ;;  %v3932_v40 = vld [vmem:[%s4271_s29 + $0x20] sm:$0xff]  ;;  %s4022_s29 = scalar_lea.vmem %s4904_s20, 768 }
 0x6ef   : > { %v3915_v61 = vld [vmem:[#allocation2 + $0x20] ss:$12 sps:$4 sm:$0xff]   ;;  %3080 = vmatpush1.bf16.msra.mxu0 %v3966_v26  ;;  %v3968_v63 = vpack.c.bf16 %v2834_v57, %v2833_v60  ;;  %v3969_v56 = vpack.c.bf16 %v2832_v55, %v2831_v58  ;;  %p4023_p10 = scmp.ne.s32.totalorder %s4904_s20, %s4022_s29  ;;  %p4030_p11 = scmp.lt.s32.totalorder %s4028_s15, %s4022_s29 }
 0x6f0   : > { %2858 = vst [vmem:[#allocation2 + $0xc8] sm:$0xf] %v3504_v53  ;;  %2860 = vst [vmem:[#allocation2 + $0xd4] sm:$0xf] %v3506_v62  ;;  %3121 = vmatpush1.bf16.msra.mxu1 %v3915_v61 }
 0x6f1   : > { %3122 = vmatprep.subr.bf16.mxu1 %v4096_v28  ;;  %3095 = vmatprep.subr.bf16.mxu0 %v3969_v56  ;;  %p4024_p4 = pnand %p4023_p10, %p5007_p12  ;;  %p4031_p0 = por %p4030_p11, %p4029_p8 }
 0x6f3   : > { %v3916_v35 = vld [vmem:[#allocation2 + $0x8] ss:$12 sps:$4 sm:$0xff]   ;;  %3096 = vmatpush2.bf16.msra.mxu0 %v3968_v63  ;;  %p4025_p7 = pneg %p4024_p4 }
 0x6f4   : > { %3123 = vmatpush1.bf16.msra.mxu1 %v3916_v35 }
 0x6f5   : > { %3138 = vmatprep.subr.bf16.mxu1 %v4096_v28  ;;  %p4032_p1 = pnand %p4031_p0, %p4025_p7 }
 0x6f6   : > { %3098 = vmatmul.mubr.bf16.vlgmr.msra.gmra.mxu0 %v3920_v6 }
 0x6f7   : > { %v3917_v13 = vld [vmem:[#allocation2 + $0xc8] ss:$12 sps:$4 sm:$0xff]   ;;  %v2902_v45 = vpop.permute.xlu0 %2901  ;;  %v2907_v54 = vpop.permute.xlu1 %2906 }
 0x6f8   : > { %3139 = vmatpush2.bf16.msra.mxu1 %v3917_v13 }
 0x6fb   : > { %3141 = vmatmul.mubr.bf16.vlgmr.msra.gmra.mxu1 %v3920_v6 }
 0x7b6   : > { %v3099_v39 = vpop.f32.mrf.mxu0 }
 0x7b7   : > { %v3100_v51 = vadd.f32 %v3099_v39, %v2902_v45 }
 0x7b8   : > { %v3101_v59 = vpop.f32.mrf.mxu0 }
 0x7b9   : > { %v3149_v14 = vadd.f32 %v3928_v50, %v3100_v51  ;;  %v3102_v15 = vadd.f32 %v3101_v59, %v2902_v45 }
 0x7ba   : > { %v3103_v28 = vpop.f32.mrf.mxu0 }
 0x7bb   : > { %v3142_v16 = vpop.f32.mrf.mxu1  ;;  %v3155_v17 = vmul.f32 %v3149_v14, %v4373_v18  ;;  %v3150_v19 = vadd.f32 %v3929_v8, %v3102_v15  ;;  %v3104_v22 = vadd.f32 %v3103_v28, %v2907_v54 }
 0x7bc   : > { %v3143_v3 = vadd.f32 %v3142_v16, %v2902_v45  ;;  %v3105_v23 = vpop.f32.mrf.mxu0 }
 0x7bd   : > { %v3144_v0 = vpop.f32.mrf.mxu1  ;;  %3161 = vst [vmem:[%s432_s19] sm:$0xff] %v3155_v17  ;;  %v3156_v2 = vmul.f32 %v3150_v19, %v4375_v20  ;;  %v3152_v25 = vadd.f32 %v3931_v24, %v3104_v22  ;;  %v3106_v29 = vadd.f32 %v3105_v23, %v2907_v54 }
 0x7be   : > { %v3151_v46 = vadd.f32 %v3930_v38, %v3143_v3 }
 0x7bf   : > { %v3145_v34 = vpop.f32.mrf.mxu1  ;;  %3162 = vst [vmem:[%s432_s19 + $0x8] sm:$0xff] %v3156_v2  ;;  %v3158_v37 = vmul.f32 %v3152_v25, %v4373_v18  ;;  %v3153_v32 = vadd.f32 %v3932_v40, %v3106_v29 }
 0x7c0   : > { %v3157_v42 = vmul.f32 %v3151_v46, %v4370_v4  ;;  %v3146_v36 = vadd.f32 %v3145_v34, %v2907_v54 }
 0x7c1   : > { %v3147_v21 = vpop.f32.mrf.mxu1  ;;  %3164 = vst [vmem:[%s432_s19 + $0x18] sm:$0xff] %v3158_v37  ;;  %v3159_v33 = vmul.f32 %v3153_v32, %v4375_v20 }
 0x7c2   : > { %3163 = vst [vmem:[%s432_s19 + $0x10] sm:$0xff] %v3157_v42  ;;  %v3154_v41 = vadd.f32 %v3933_v27, %v3146_v36 }
 0x7c3   : > { %3165 = vst [vmem:[%s432_s19 + $0x20] sm:$0xff] %v3159_v33 }
 0x7c4   : > { %v3160_v43 = vmul.f32 %v3154_v41, %v4370_v4 }
 0x7c6   : > { %3166 = vst [vmem:[%s432_s19 + $0x28] sm:$0xff] %v3160_v43 }
 0x7c7   : > { %4035 = shalt.err (!%p4032_p1)
}
 0x7c8   : > { %s4036_s0 = scalar_lea.hbm %s4910_s17, 768  ;;  %s4040_s18 = scalar_lea.hbm %s4966_s12, 1536 }
 0x7c9   : > { %p4037_p2 = scmp.ne.s32.totalorder %s4910_s17, %s4036_s0  ;;  %p4041_p9 = scmp.lt.s32.totalorder %s4910_s17, %s4966_s12 }
 0x7ca   : > { %p4042_p5 = scmp.lt.s32.totalorder %s4040_s18, %s4036_s0 }
 0x7cb   : > { %p4038_p3 = pnand %p4037_p2, %p5007_p12 }
 0x7cc   : > { %p4043_p6 = por %p4042_p5, %p4041_p9 }
 0x7cd   : > { %p4039_p13 = pneg %p4038_p3 }
 0x7cf   : > { %p4044_p10 = pnand %p4043_p6, %p4039_p13 }
 0x7d1   : > { %4047 = shalt.err (!%p4044_p10)
}
 0x7d2   : > { %s4106_s29 = smov 384   ;;  %s4107_s16 = smov 24  }
 0x7d3   : > { %3590 = dma.vmem_to_hbm [thread:$0]  (%p5007_p12), %s4904_s20, 768, %s4910_s17, %s4914_s25, %s4106_s29, %s4106_s29, %s4107_s16  }
 0x7d4 PF: > { %p3607_p4 = scmp.ge.s32.totalorder %s4090_s24, 2  ;;  %s3196_s15 = sand.u32 1, %s4078_s21  }
 0x7d5   : > { %p5008_p7 = scmp.ne.s32.totalorder %s4989_s14, 0  ;;  %s3197_s0 = scalar_lea.sflag [#allocation5], %s3196_s15 }
 0x7d7   : > { %p3600_p8 = pnand %p3607_p4, %p5008_p7 }
 0x7d9   : > { %p3601_p11 = pneg %p3600_p8 }
 0x7db   : > { %4073 = dma.done.wait (%p3601_p11), %s3197_s0, 768  }
 0x7dc   : > { %4075 = vsyncadd (%p3601_p11), %s3197_s0, 4294966528  ;;  %p24_p0 = scmp.ge.s32.totalorder %s4198_s27, 4   ;;  %s5009_s21 = smov %s4082_s22 }
 0x7dd   : > { %s5010_s22 = smov %s4086_s23  ;;  %s5011_s23 = smov %s4209_s30 }
 0x7de   : > { %s5012_s24 = smov %s4198_s27  ;;  %26 = sbr.rel (!%p24_p0) target bundleno = 8 (0x8), region = 112 }
 0x7e3   :  { %3202 = vsyncpa [#allocation4], 1 }
 0x7e4   :  { %3204 = vsyncpa [#allocation4 + $0x1], 1 }
 0x7e5   :  { %3205 = vsyncpa [#allocation7], 1 }
 0x7e6   :  { %3206 = vsyncpa [#allocation5], 1 }
 0x7e7   :  { %3208 = vsyncpa [#allocation5 + $0x1], 1 }

</bundles_post_ra>
